<compile_context>
chip_gen: v5e
topology: v5e:2x2
jax: 0.10.0
libtpu: 0.0.40
codegen_flags: <defaults>
</compile_context>

<pallas_src>
import functools

import jax
import jax.numpy as jnp
from jax.experimental import pallas as pl
from jax.experimental.pallas import tpu as pltpu

NEG_SLOPE = 0.05


# --------------------------------------------------------------------------
# Kernel
# --------------------------------------------------------------------------
def repblock_kernel(xw_ref, w0t_ref, b0_ref, km_ref, dwk_ref, bout_ref,
                    out_ref, *, tile_rows, width, wp):
    """One (batch, row-tile) grid step.

    xw_ref  : (1, 1, C, Sp) f32  zero-padded input window, spatial flattened
                                 row-major over (tile_rows+2, wp); Sp is padded
                                 to >= (tile_rows+2)*wp + 2 (multiple of 128).
    w0t_ref : (3C, C)  bf16  stacked SeqConv 1x1 weights [sbx; sby; lpl].
    b0_ref  : (3C, 1)  f32   matching SeqConv 1x1 biases.
    km_ref  : (9, C, C) bf16 fused dense 3x3 (3x3+3x1+1x3+1x1+1x1->3x3), one
                             (Cout, Cin) matrix per tap, tap index = dh*3+dw.
    dwk_ref : (3, 9, C, 1) f32  SeqConv depthwise weights (branch, tap, chan).
    bout_ref: (C, 1)   f32   sum of every output-side bias.
    out_ref : (1, C, tile_rows*width) f32  lane-dense NCHW output tile.
    """
    C = w0t_ref.shape[1]
    M = tile_rows * wp                    # flattened (padded-width) output cols

    x_f32 = xw_ref[0, 0]                  # (C, Sp) exact f32 (residual path)
    x_bf = x_f32.astype(jnp.bfloat16)     # MXU operand

    # --- Stage 1: shared SeqConv 1x1 stage, ONE GEMM over the padded tile.
    # Zero halo columns yield fc == b0 there, which is exactly the SeqConv
    # border-assignment trick of the reference module.
    fc = jnp.dot(w0t_ref[...], x_bf,
                 preferred_element_type=jnp.float32) + b0_ref[...]   # (3C, Sp)

    km = km_ref[...]                      # (9, C, C)   bf16
    dwk = dwk_ref[...]                    # (3, 9, C, 1) f32

    # --- Stage 2: nine K=C dense tap GEMMs (N = spatial, lane-dense) plus
    # 27 per-channel VPU broadcast-FMAs for the SeqConv depthwise taps.
    # Biases + exact f32 residual (the window centre column is x itself).
    acc = bout_ref[...] + x_f32[:, wp + 1:wp + 1 + M]                 # (C, M)
    for dh in range(3):
        for dw in range(3):
            t = dh * 3 + dw
            off = dh * wp + dw
            acc = acc + jnp.dot(km[t], x_bf[:, off:off + M],
                                preferred_element_type=jnp.float32)
            for s in range(3):
                acc = acc + dwk[s, t] * fc[s * C:(s + 1) * C, off:off + M]

    # LeakyReLU(0.05): max(y, 0.05*y), valid because 0 < slope < 1.
    acc = jnp.maximum(acc, NEG_SLOPE * acc)

    # Drop the two pad columns at the end of each row -> (C, tile_rows*width),
    # written lane-dense straight into the NCHW output (no transpose).
    rows = [acc[:, h * wp:h * wp + width] for h in range(tile_rows)]
    out_ref[0] = jnp.concatenate(rows, axis=1)


# --------------------------------------------------------------------------
# Parameter construction / fusion
# --------------------------------------------------------------------------
def init_raw_params(key, C):
    """Deterministic synthetic parameters in PyTorch (OIHW) layouts."""
    C2 = 2 * C
    ks = iter(jax.random.split(key, 40))
    nrm = lambda shape, s=0.1: jax.random.normal(next(ks), shape, jnp.float32) * s
    raw = dict(
        w33=nrm((C, C, 3, 3)), b33=nrm((C,)),
        w31=nrm((C, C, 3, 1)), b31=nrm((C,)),
        w13=nrm((C, C, 1, 3)), b13=nrm((C,)),
        w11=nrm((C, C, 1, 1)), b11=nrm((C,)),
        wA=nrm((C2, C, 1, 1)),                 # 1x1 expansion, no bias
        wB=nrm((C, C2, 3, 3)),                 # 3x3 after expansion, no bias
    )
    masks = dict(
        sbx=jnp.array([[1., 0., -1.], [2., 0., -2.], [1., 0., -1.]], jnp.float32),
        sby=jnp.array([[1., 2., 1.], [0., 0., 0.], [-1., -2., -1.]], jnp.float32),
        lpl=jnp.array([[0., 1., 0.], [1., -4., 1.], [0., 1., 0.]], jnp.float32),
    )
    for name in ('sbx', 'sby', 'lpl'):
        raw[name] = dict(
            k0=nrm((C, C, 1, 1)), b0=nrm((C,)),
            scale=nrm((C, 1, 1, 1), 0.001), bias=nrm((C,), 0.001),
            mask=jnp.broadcast_to(masks[name][None, None], (C, 1, 3, 3)),
        )
    return raw


def to_kernel_params(raw, C):
    """Fuse RepBlock branches (exact linear algebra) into the kernel layouts.

    All purely-linear dense branches (3x3, 3x1, 1x3, 1x1, 1x1->3x3 expansion)
    fold into one equivalent 3x3 kernel, same identity the module's own
    switch_to_deploy uses.  The identity branch is NOT folded any more: the
    kernel adds the residual explicitly in f32 (review correctness note).
    """
    kmain = raw['w33']
    kmain = kmain.at[:, :, :, 1].add(raw['w31'][:, :, :, 0])        # 3x1 @ kw=1
    kmain = kmain.at[:, :, 1, :].add(raw['w13'][:, :, 0, :])        # 1x3 @ kh=1
    kmain = kmain.at[:, :, 1, 1].add(raw['w11'][:, :, 0, 0])        # 1x1 @ ctr
    kmain = kmain + jnp.einsum('omhw,mi->oihw', raw['wB'],
                               raw['wA'][:, :, 0, 0])               # 1x1->3x3
    bout = raw['b33'] + raw['b31'] + raw['b13'] + raw['b11']

    # (9, Cout, Cin): one matrix per 3x3 tap, tap index = dh*3 + dw.
    km = jnp.transpose(kmain, (2, 3, 0, 1)).reshape(9, C, C)

    w0t, b0, dwk = [], [], []
    for name in ('sbx', 'sby', 'lpl'):
        br = raw[name]
        w0t.append(br['k0'][:, :, 0, 0])                            # (Cout, Cin)
        b0.append(br['b0'])
        dwk.append(jnp.transpose((br['scale'] * br['mask'])[:, 0],
                                 (1, 2, 0)).reshape(9, C, 1))       # (9, C, 1)
        bout = bout + br['bias']

    return dict(
        w0t=jnp.concatenate(w0t, axis=0).astype(jnp.bfloat16),      # (3C, C)
        b0=jnp.concatenate(b0).reshape(3 * C, 1),                   # (3C, 1)
        km=km.astype(jnp.bfloat16),                                 # (9, C, C)
        dwk=jnp.stack(dwk, axis=0),                                 # (3, 9, C, 1)
        bout=bout.reshape(C, 1),                                    # (C, 1)
    )


# --------------------------------------------------------------------------
# Wrapper
# --------------------------------------------------------------------------
def _pick_tile_rows(H, W, C):
    """Largest row tile TH that (a) divides H, (b) keeps output stores
    lane-dense ((TH*W) % 128 == 0), (c) keeps the per-tile f32 input window
    under a few MiB so the whole working set fits v7x's 64 MiB VMEM, and
    (d) leaves >= 2 tiles so pipeline/megacore has something to overlap."""
    Wp = W + 2
    budget = 4 * 2 ** 20
    cands = [th for th in range(1, H + 1)
             if H % th == 0 and (th * W) % 128 == 0
             and 4 * C * (th + 2) * Wp <= budget]
    if not cands:
        return H          # single tile: last dim == full dim is always legal
    multi = [th for th in cands if H // th >= 2]
    return max(multi) if multi else max(cands)


@functools.partial(jax.jit, static_argnames=('tile_rows',))
def repblock_forward(x_nchw, kp, tile_rows=None):
    B, C, H, W = x_nchw.shape
    TH = _pick_tile_rows(H, W, C) if tile_rows is None else tile_rows
    assert H % TH == 0, "tile_rows must divide H"
    nt = H // TH
    assert nt == 1 or (TH * W) % 128 == 0, "need lane-dense output tiles"
    Wp = W + 2
    S0 = (TH + 2) * Wp
    Sp = -(-(S0 + 2) // 128) * 128        # room for the (dh=2,dw=2) slice
    F = kp['w0t'].shape[0]                # 3C

    x = x_nchw.astype(jnp.float32)
    xpad = jnp.pad(x, ((0, 0), (0, 0), (1, 1), (1, 1)))          # (B,C,Hp,Wp)
    # Overlapping row windows with a 2-row zero halo, flattened row-major over
    # (TH+2, Wp) so the kernel's lane axis is already the padded spatial axis.
    wins = jnp.stack([xpad[:, :, t * TH:t * TH + TH + 2, :] for t in range(nt)],
                     axis=1)                                     # (B,nt,C,TH+2,Wp)
    wins = jnp.pad(wins.reshape(B, nt, C, S0),
                   ((0, 0), (0, 0), (0, 0), (0, Sp - S0)))       # (B,nt,C,Sp)

    kern = functools.partial(repblock_kernel, tile_rows=TH, width=W, wp=Wp)

    # VMEM budget: double-buffered in/out blocks + big in-kernel temporaries
    # (fc, x_bf, acc) + weights; x2 safety, floored at the default 32 MiB.
    est = 4 * (2 * C * Sp + 2 * C * TH * W + 3 * C * Sp + 2 * C * TH * Wp) \
        + 2 * (F * C + 9 * C * C) + 4 * (F + 28 * C)
    vmem_limit = int(min(max(2 * est, 32 * 2 ** 20), 64 * 2 ** 20))

    flops = 2 * B * nt * (F * C * Sp + 9 * C * C * TH * Wp) \
        + B * nt * C * TH * Wp * 60
    bytes_accessed = 4 * B * nt * C * Sp + 4 * B * C * H * W \
        + B * nt * (2 * (F * C + 9 * C * C) + 4 * (F + 28 * C))

    out = pl.pallas_call(
        kern,
        out_shape=jax.ShapeDtypeStruct((B, C, H * W), jnp.float32),
        grid=(B, nt),
        in_specs=[
            pl.BlockSpec((1, 1, C, Sp), lambda b, t: (b, t, 0, 0)),
            pl.BlockSpec((F, C), lambda b, t: (0, 0)),
            pl.BlockSpec((F, 1), lambda b, t: (0, 0)),
            pl.BlockSpec((9, C, C), lambda b, t: (0, 0, 0)),
            pl.BlockSpec((3, 9, C, 1), lambda b, t: (0, 0, 0, 0)),
            pl.BlockSpec((C, 1), lambda b, t: (0, 0)),
        ],
        out_specs=pl.BlockSpec((1, C, TH * W), lambda b, t: (b, 0, t)),
        compiler_params=pltpu.CompilerParams(
            dimension_semantics=("parallel", "parallel"),
            vmem_limit_bytes=vmem_limit),
        cost_estimate=pl.CostEstimate(flops=flops, transcendentals=0,
                                      bytes_accessed=bytes_accessed),
    )(wins, kp['w0t'], kp['b0'], kp['km'], kp['dwk'], kp['bout'])

    return out.reshape(B, C, H, W)        # free metadata reshape, already NCHW


# --------------------------------------------------------------------------
# Pure-JAX reference (NCHW, mirrors the PyTorch module exactly)
# --------------------------------------------------------------------------
def _conv_nchw(x, w, b=None, pad=((0, 0), (0, 0)), groups=1):
    y = jax.lax.conv_general_dilated(
        x, w, (1, 1), pad, dimension_numbers=('NCHW', 'OIHW', 'NCHW'),
        feature_group_count=groups, precision=jax.lax.Precision.HIGHEST)
    if b is not None:
        y = y + b.reshape(1, -1, 1, 1)
    return y


def _seqconv_ref(x, p, C):
    y0 = _conv_nchw(x, p['k0'], p['b0'])
    y0 = jnp.pad(y0, ((0, 0), (0, 0), (1, 1), (1, 1)))
    b0r = p['b0'].reshape(1, -1, 1, 1)
    y0 = y0.at[:, :, 0:1, :].set(b0r)
    y0 = y0.at[:, :, -1:, :].set(b0r)
    y0 = y0.at[:, :, :, 0:1].set(b0r)
    y0 = y0.at[:, :, :, -1:].set(b0r)
    return _conv_nchw(y0, p['scale'] * p['mask'], p['bias'], groups=C)


def repblock_reference(x, raw, C):
    y = (_conv_nchw(x, raw['w33'], raw['b33'], pad=((1, 1), (1, 1)))
         + _conv_nchw(x, raw['w31'], raw['b31'], pad=((1, 1), (0, 0)))
         + _conv_nchw(x, raw['w13'], raw['b13'], pad=((0, 0), (1, 1)))
         + _conv_nchw(x, raw['w11'], raw['b11'])
         + _conv_nchw(_conv_nchw(x, raw['wA']), raw['wB'], pad=((1, 1), (1, 1)))
         + x
         + _seqconv_ref(x, raw['sbx'], C)
         + _seqconv_ref(x, raw['sby'], C)
         + _seqconv_ref(x, raw['lpl'], C))
    return jnp.where(y >= 0, y, NEG_SLOPE * y)


if __name__ == "__main__":
    B, C, H, W = 2, 4, 16, 16
    key = jax.random.PRNGKey(0)
    kx, kparam = jax.random.split(key)
    x = jax.random.normal(kx, (B, C, H, W), dtype=jnp.float32)

    raw = init_raw_params(kparam, C)
    params = to_kernel_params(raw, C)

    y = repblock_forward(x, params)
    jax.block_until_ready(y)
    assert y.shape == (B, C, H, W) and y.dtype == jnp.float32

    y_ref = repblock_reference(x, raw, C)
    # GEMM operands are bf16 (f32 accumulation) per the perf review; the
    # residual, biases and activation stay f32.  Tolerance is sized for bf16
    # operand rounding (~2^-9 relative) accumulated over the 9*C dense-tap MAC
    # terms; the f32 reference uses Precision.HIGHEST.
    err = float(jnp.max(jnp.abs(y - y_ref)))
    assert jnp.allclose(y, y_ref, atol=4e-2, rtol=4e-2), err

    print("KERNEL_OK")
</pallas_src>

<mosaic_0001>
module attributes {stable_mosaic.version = 11 : i64} {
  func.func @repblock_kernel(%arg0: i32, %arg1: i32, %arg2: memref<1x1x4x256xf32, #tpu.memory_space<vmem>>, %arg3: memref<12x4xbf16, #tpu.memory_space<vmem>>, %arg4: memref<12x1xf32, #tpu.memory_space<vmem>>, %arg5: memref<9x4x4xbf16, #tpu.memory_space<vmem>>, %arg6: memref<3x9x4x1xf32, #tpu.memory_space<vmem>>, %arg7: memref<4x1xf32, #tpu.memory_space<vmem>>, %arg8: memref<1x4x128xf32, #tpu.memory_space<vmem>>) attributes {dimension_semantics = [#tpu.dimension_semantics<parallel>, #tpu.dimension_semantics<parallel>], iteration_bounds = array<i64: 2, 2>, scalar_prefetch = 0 : i64, scratch_operands = 0 : i64, tpu.core_type = #tpu.core_type<tc>, window_params = [{transform_indices = @transform_0, window_bounds = array<i64: 1, 1, 4, 256>}, {pipeline_mode = #tpu.pipeline_mode<synchronous>, transform_indices = @transform_1, window_bounds = array<i64: 12, 4>}, {pipeline_mode = #tpu.pipeline_mode<synchronous>, transform_indices = @transform_2, window_bounds = array<i64: 12, 1>}, {pipeline_mode = #tpu.pipeline_mode<synchronous>, transform_indices = @transform_3, window_bounds = array<i64: 9, 4, 4>}, {pipeline_mode = #tpu.pipeline_mode<synchronous>, transform_indices = @transform_4, window_bounds = array<i64: 3, 9, 4, 1>}, {pipeline_mode = #tpu.pipeline_mode<synchronous>, transform_indices = @transform_5, window_bounds = array<i64: 4, 1>}, {transform_indices = @transform_6, window_bounds = array<i64: 1, 4, 128>}]} {
    %c0 = arith.constant 0 : index
    %c0_0 = arith.constant 0 : index
    %c0_1 = arith.constant 0 : index
    %c0_2 = arith.constant 0 : index
    %0 = vector.load %arg2[%c0, %c0_0, %c0_1, %c0_2] : memref<1x1x4x256xf32, #tpu.memory_space<vmem>>, vector<1x1x4x256xf32>
    %1 = vector.shape_cast %0 : vector<1x1x4x256xf32> to vector<4x256xf32>
    %2 = arith.truncf %1 : vector<4x256xf32> to vector<4x256xbf16>
    %c0_3 = arith.constant 0 : index
    %c0_4 = arith.constant 0 : index
    %3 = vector.load %arg3[%c0_3, %c0_4] : memref<12x4xbf16, #tpu.memory_space<vmem>>, vector<12x4xbf16>
    %cst = arith.constant dense<0.000000e+00> : vector<12x256xf32>
    %4 = tpu.matmul %3, %2, %cst {dimension_numbers = #tpu.dot_dimension_numbers<[1], [0], [0], [1], [0, 0, 1, 1], [], []>} : vector<12x4xbf16>, vector<4x256xbf16>, vector<12x256xf32> -> vector<12x256xf32>
    %c0_5 = arith.constant 0 : index
    %c0_6 = arith.constant 0 : index
    %5 = vector.load %arg4[%c0_5, %c0_6] : memref<12x1xf32, #tpu.memory_space<vmem>>, vector<12x1xf32>
    %6 = vector.broadcast %5 : vector<12x1xf32> to vector<12x256xf32>
    %7 = arith.addf %4, %6 : vector<12x256xf32>
    %c0_7 = arith.constant 0 : index
    %c0_8 = arith.constant 0 : index
    %c0_9 = arith.constant 0 : index
    %8 = vector.load %arg5[%c0_7, %c0_8, %c0_9] : memref<9x4x4xbf16, #tpu.memory_space<vmem>>, vector<9x4x4xbf16>
    %c0_10 = arith.constant 0 : index
    %c0_11 = arith.constant 0 : index
    %c0_12 = arith.constant 0 : index
    %c0_13 = arith.constant 0 : index
    %9 = vector.load %arg6[%c0_10, %c0_11, %c0_12, %c0_13] : memref<3x9x4x1xf32, #tpu.memory_space<vmem>>, vector<3x9x4x1xf32>
    %c0_14 = arith.constant 0 : index
    %c0_15 = arith.constant 0 : index
    %10 = vector.load %arg7[%c0_14, %c0_15] : memref<4x1xf32, #tpu.memory_space<vmem>>, vector<4x1xf32>
    %11 = vector.extract_strided_slice %1 {offsets = [0, 19], sizes = [4, 144], strides = [1, 1]} : vector<4x256xf32> to vector<4x144xf32>
    %12 = vector.broadcast %10 : vector<4x1xf32> to vector<4x144xf32>
    %13 = arith.addf %12, %11 : vector<4x144xf32>
    %14 = vector.extract_strided_slice %8 {offsets = [0, 0, 0], sizes = [1, 4, 4], strides = [1, 1, 1]} : vector<9x4x4xbf16> to vector<1x4x4xbf16>
    %15 = vector.shape_cast %14 : vector<1x4x4xbf16> to vector<4x4xbf16>
    %16 = vector.extract_strided_slice %2 {offsets = [0, 0], sizes = [4, 144], strides = [1, 1]} : vector<4x256xbf16> to vector<4x144xbf16>
    %cst_16 = arith.constant dense<0.000000e+00> : vector<4x144xf32>
    %17 = tpu.matmul %15, %16, %cst_16 {dimension_numbers = #tpu.dot_dimension_numbers<[1], [0], [0], [1], [0, 0, 1, 1], [], []>} : vector<4x4xbf16>, vector<4x144xbf16>, vector<4x144xf32> -> vector<4x144xf32>
    %18 = arith.addf %13, %17 : vector<4x144xf32>
    %19 = vector.extract_strided_slice %9 {offsets = [0, 0, 0, 0], sizes = [1, 1, 4, 1], strides = [1, 1, 1, 1]} : vector<3x9x4x1xf32> to vector<1x1x4x1xf32>
    %20 = vector.shape_cast %19 : vector<1x1x4x1xf32> to vector<4x1xf32>
    %21 = vector.extract_strided_slice %7 {offsets = [0, 0], sizes = [4, 144], strides = [1, 1]} : vector<12x256xf32> to vector<4x144xf32>
    %22 = vector.broadcast %20 : vector<4x1xf32> to vector<4x144xf32>
    %23 = arith.mulf %22, %21 : vector<4x144xf32>
    %24 = arith.addf %18, %23 : vector<4x144xf32>
    %25 = vector.extract_strided_slice %9 {offsets = [1, 0, 0, 0], sizes = [1, 1, 4, 1], strides = [1, 1, 1, 1]} : vector<3x9x4x1xf32> to vector<1x1x4x1xf32>
    %26 = vector.shape_cast %25 : vector<1x1x4x1xf32> to vector<4x1xf32>
    %27 = vector.extract_strided_slice %7 {offsets = [4, 0], sizes = [4, 144], strides = [1, 1]} : vector<12x256xf32> to vector<4x144xf32>
    %28 = vector.broadcast %26 : vector<4x1xf32> to vector<4x144xf32>
    %29 = arith.mulf %28, %27 : vector<4x144xf32>
    %30 = arith.addf %24, %29 : vector<4x144xf32>
    %31 = vector.extract_strided_slice %9 {offsets = [2, 0, 0, 0], sizes = [1, 1, 4, 1], strides = [1, 1, 1, 1]} : vector<3x9x4x1xf32> to vector<1x1x4x1xf32>
    %32 = vector.shape_cast %31 : vector<1x1x4x1xf32> to vector<4x1xf32>
    %33 = vector.extract_strided_slice %7 {offsets = [8, 0], sizes = [4, 144], strides = [1, 1]} : vector<12x256xf32> to vector<4x144xf32>
    %34 = vector.broadcast %32 : vector<4x1xf32> to vector<4x144xf32>
    %35 = arith.mulf %34, %33 : vector<4x144xf32>
    %36 = arith.addf %30, %35 : vector<4x144xf32>
    %37 = vector.extract_strided_slice %8 {offsets = [1, 0, 0], sizes = [1, 4, 4], strides = [1, 1, 1]} : vector<9x4x4xbf16> to vector<1x4x4xbf16>
    %38 = vector.shape_cast %37 : vector<1x4x4xbf16> to vector<4x4xbf16>
    %39 = vector.extract_strided_slice %2 {offsets = [0, 1], sizes = [4, 144], strides = [1, 1]} : vector<4x256xbf16> to vector<4x144xbf16>
    %cst_17 = arith.constant dense<0.000000e+00> : vector<4x144xf32>
    %40 = tpu.matmul %38, %39, %cst_17 {dimension_numbers = #tpu.dot_dimension_numbers<[1], [0], [0], [1], [0, 0, 1, 1], [], []>} : vector<4x4xbf16>, vector<4x144xbf16>, vector<4x144xf32> -> vector<4x144xf32>
    %41 = arith.addf %36, %40 : vector<4x144xf32>
    %42 = vector.extract_strided_slice %9 {offsets = [0, 1, 0, 0], sizes = [1, 1, 4, 1], strides = [1, 1, 1, 1]} : vector<3x9x4x1xf32> to vector<1x1x4x1xf32>
    %43 = vector.shape_cast %42 : vector<1x1x4x1xf32> to vector<4x1xf32>
    %44 = vector.extract_strided_slice %7 {offsets = [0, 1], sizes = [4, 144], strides = [1, 1]} : vector<12x256xf32> to vector<4x144xf32>
    %45 = vector.broadcast %43 : vector<4x1xf32> to vector<4x144xf32>
    %46 = arith.mulf %45, %44 : vector<4x144xf32>
    %47 = arith.addf %41, %46 : vector<4x144xf32>
    %48 = vector.extract_strided_slice %9 {offsets = [1, 1, 0, 0], sizes = [1, 1, 4, 1], strides = [1, 1, 1, 1]} : vector<3x9x4x1xf32> to vector<1x1x4x1xf32>
    %49 = vector.shape_cast %48 : vector<1x1x4x1xf32> to vector<4x1xf32>
    %50 = vector.extract_strided_slice %7 {offsets = [4, 1], sizes = [4, 144], strides = [1, 1]} : vector<12x256xf32> to vector<4x144xf32>
    %51 = vector.broadcast %49 : vector<4x1xf32> to vector<4x144xf32>
    %52 = arith.mulf %51, %50 : vector<4x144xf32>
    %53 = arith.addf %47, %52 : vector<4x144xf32>
    %54 = vector.extract_strided_slice %9 {offsets = [2, 1, 0, 0], sizes = [1, 1, 4, 1], strides = [1, 1, 1, 1]} : vector<3x9x4x1xf32> to vector<1x1x4x1xf32>
    %55 = vector.shape_cast %54 : vector<1x1x4x1xf32> to vector<4x1xf32>
    %56 = vector.extract_strided_slice %7 {offsets = [8, 1], sizes = [4, 144], strides = [1, 1]} : vector<12x256xf32> to vector<4x144xf32>
    %57 = vector.broadcast %55 : vector<4x1xf32> to vector<4x144xf32>
    %58 = arith.mulf %57, %56 : vector<4x144xf32>
    %59 = arith.addf %53, %58 : vector<4x144xf32>
    %60 = vector.extract_strided_slice %8 {offsets = [2, 0, 0], sizes = [1, 4, 4], strides = [1, 1, 1]} : vector<9x4x4xbf16> to vector<1x4x4xbf16>
    %61 = vector.shape_cast %60 : vector<1x4x4xbf16> to vector<4x4xbf16>
    %62 = vector.extract_strided_slice %2 {offsets = [0, 2], sizes = [4, 144], strides = [1, 1]} : vector<4x256xbf16> to vector<4x144xbf16>
    %cst_18 = arith.constant dense<0.000000e+00> : vector<4x144xf32>
    %63 = tpu.matmul %61, %62, %cst_18 {dimension_numbers = #tpu.dot_dimension_numbers<[1], [0], [0], [1], [0, 0, 1, 1], [], []>} : vector<4x4xbf16>, vector<4x144xbf16>, vector<4x144xf32> -> vector<4x144xf32>
    %64 = arith.addf %59, %63 : vector<4x144xf32>
    %65 = vector.extract_strided_slice %9 {offsets = [0, 2, 0, 0], sizes = [1, 1, 4, 1], strides = [1, 1, 1, 1]} : vector<3x9x4x1xf32> to vector<1x1x4x1xf32>
    %66 = vector.shape_cast %65 : vector<1x1x4x1xf32> to vector<4x1xf32>
    %67 = vector.extract_strided_slice %7 {offsets = [0, 2], sizes = [4, 144], strides = [1, 1]} : vector<12x256xf32> to vector<4x144xf32>
    %68 = vector.broadcast %66 : vector<4x1xf32> to vector<4x144xf32>
    %69 = arith.mulf %68, %67 : vector<4x144xf32>
    %70 = arith.addf %64, %69 : vector<4x144xf32>
    %71 = vector.extract_strided_slice %9 {offsets = [1, 2, 0, 0], sizes = [1, 1, 4, 1], strides = [1, 1, 1, 1]} : vector<3x9x4x1xf32> to vector<1x1x4x1xf32>
    %72 = vector.shape_cast %71 : vector<1x1x4x1xf32> to vector<4x1xf32>
    %73 = vector.extract_strided_slice %7 {offsets = [4, 2], sizes = [4, 144], strides = [1, 1]} : vector<12x256xf32> to vector<4x144xf32>
    %74 = vector.broadcast %72 : vector<4x1xf32> to vector<4x144xf32>
    %75 = arith.mulf %74, %73 : vector<4x144xf32>
    %76 = arith.addf %70, %75 : vector<4x144xf32>
    %77 = vector.extract_strided_slice %9 {offsets = [2, 2, 0, 0], sizes = [1, 1, 4, 1], strides = [1, 1, 1, 1]} : vector<3x9x4x1xf32> to vector<1x1x4x1xf32>
    %78 = vector.shape_cast %77 : vector<1x1x4x1xf32> to vector<4x1xf32>
    %79 = vector.extract_strided_slice %7 {offsets = [8, 2], sizes = [4, 144], strides = [1, 1]} : vector<12x256xf32> to vector<4x144xf32>
    %80 = vector.broadcast %78 : vector<4x1xf32> to vector<4x144xf32>
    %81 = arith.mulf %80, %79 : vector<4x144xf32>
    %82 = arith.addf %76, %81 : vector<4x144xf32>
    %83 = vector.extract_strided_slice %8 {offsets = [3, 0, 0], sizes = [1, 4, 4], strides = [1, 1, 1]} : vector<9x4x4xbf16> to vector<1x4x4xbf16>
    %84 = vector.shape_cast %83 : vector<1x4x4xbf16> to vector<4x4xbf16>
    %85 = vector.extract_strided_slice %2 {offsets = [0, 18], sizes = [4, 144], strides = [1, 1]} : vector<4x256xbf16> to vector<4x144xbf16>
    %cst_19 = arith.constant dense<0.000000e+00> : vector<4x144xf32>
    %86 = tpu.matmul %84, %85, %cst_19 {dimension_numbers = #tpu.dot_dimension_numbers<[1], [0], [0], [1], [0, 0, 1, 1], [], []>} : vector<4x4xbf16>, vector<4x144xbf16>, vector<4x144xf32> -> vector<4x144xf32>
    %87 = arith.addf %82, %86 : vector<4x144xf32>
    %88 = vector.extract_strided_slice %9 {offsets = [0, 3, 0, 0], sizes = [1, 1, 4, 1], strides = [1, 1, 1, 1]} : vector<3x9x4x1xf32> to vector<1x1x4x1xf32>
    %89 = vector.shape_cast %88 : vector<1x1x4x1xf32> to vector<4x1xf32>
    %90 = vector.extract_strided_slice %7 {offsets = [0, 18], sizes = [4, 144], strides = [1, 1]} : vector<12x256xf32> to vector<4x144xf32>
    %91 = vector.broadcast %89 : vector<4x1xf32> to vector<4x144xf32>
    %92 = arith.mulf %91, %90 : vector<4x144xf32>
    %93 = arith.addf %87, %92 : vector<4x144xf32>
    %94 = vector.extract_strided_slice %9 {offsets = [1, 3, 0, 0], sizes = [1, 1, 4, 1], strides = [1, 1, 1, 1]} : vector<3x9x4x1xf32> to vector<1x1x4x1xf32>
    %95 = vector.shape_cast %94 : vector<1x1x4x1xf32> to vector<4x1xf32>
    %96 = vector.extract_strided_slice %7 {offsets = [4, 18], sizes = [4, 144], strides = [1, 1]} : vector<12x256xf32> to vector<4x144xf32>
    %97 = vector.broadcast %95 : vector<4x1xf32> to vector<4x144xf32>
    %98 = arith.mulf %97, %96 : vector<4x144xf32>
    %99 = arith.addf %93, %98 : vector<4x144xf32>
    %100 = vector.extract_strided_slice %9 {offsets = [2, 3, 0, 0], sizes = [1, 1, 4, 1], strides = [1, 1, 1, 1]} : vector<3x9x4x1xf32> to vector<1x1x4x1xf32>
    %101 = vector.shape_cast %100 : vector<1x1x4x1xf32> to vector<4x1xf32>
    %102 = vector.extract_strided_slice %7 {offsets = [8, 18], sizes = [4, 144], strides = [1, 1]} : vector<12x256xf32> to vector<4x144xf32>
    %103 = vector.broadcast %101 : vector<4x1xf32> to vector<4x144xf32>
    %104 = arith.mulf %103, %102 : vector<4x144xf32>
    %105 = arith.addf %99, %104 : vector<4x144xf32>
    %106 = vector.extract_strided_slice %8 {offsets = [4, 0, 0], sizes = [1, 4, 4], strides = [1, 1, 1]} : vector<9x4x4xbf16> to vector<1x4x4xbf16>
    %107 = vector.shape_cast %106 : vector<1x4x4xbf16> to vector<4x4xbf16>
    %108 = vector.extract_strided_slice %2 {offsets = [0, 19], sizes = [4, 144], strides = [1, 1]} : vector<4x256xbf16> to vector<4x144xbf16>
    %cst_20 = arith.constant dense<0.000000e+00> : vector<4x144xf32>
    %109 = tpu.matmul %107, %108, %cst_20 {dimension_numbers = #tpu.dot_dimension_numbers<[1], [0], [0], [1], [0, 0, 1, 1], [], []>} : vector<4x4xbf16>, vector<4x144xbf16>, vector<4x144xf32> -> vector<4x144xf32>
    %110 = arith.addf %105, %109 : vector<4x144xf32>
    %111 = vector.extract_strided_slice %9 {offsets = [0, 4, 0, 0], sizes = [1, 1, 4, 1], strides = [1, 1, 1, 1]} : vector<3x9x4x1xf32> to vector<1x1x4x1xf32>
    %112 = vector.shape_cast %111 : vector<1x1x4x1xf32> to vector<4x1xf32>
    %113 = vector.extract_strided_slice %7 {offsets = [0, 19], sizes = [4, 144], strides = [1, 1]} : vector<12x256xf32> to vector<4x144xf32>
    %114 = vector.broadcast %112 : vector<4x1xf32> to vector<4x144xf32>
    %115 = arith.mulf %114, %113 : vector<4x144xf32>
    %116 = arith.addf %110, %115 : vector<4x144xf32>
    %117 = vector.extract_strided_slice %9 {offsets = [1, 4, 0, 0], sizes = [1, 1, 4, 1], strides = [1, 1, 1, 1]} : vector<3x9x4x1xf32> to vector<1x1x4x1xf32>
    %118 = vector.shape_cast %117 : vector<1x1x4x1xf32> to vector<4x1xf32>
    %119 = vector.extract_strided_slice %7 {offsets = [4, 19], sizes = [4, 144], strides = [1, 1]} : vector<12x256xf32> to vector<4x144xf32>
    %120 = vector.broadcast %118 : vector<4x1xf32> to vector<4x144xf32>
    %121 = arith.mulf %120, %119 : vector<4x144xf32>
    %122 = arith.addf %116, %121 : vector<4x144xf32>
    %123 = vector.extract_strided_slice %9 {offsets = [2, 4, 0, 0], sizes = [1, 1, 4, 1], strides = [1, 1, 1, 1]} : vector<3x9x4x1xf32> to vector<1x1x4x1xf32>
    %124 = vector.shape_cast %123 : vector<1x1x4x1xf32> to vector<4x1xf32>
    %125 = vector.extract_strided_slice %7 {offsets = [8, 19], sizes = [4, 144], strides = [1, 1]} : vector<12x256xf32> to vector<4x144xf32>
    %126 = vector.broadcast %124 : vector<4x1xf32> to vector<4x144xf32>
    %127 = arith.mulf %126, %125 : vector<4x144xf32>
    %128 = arith.addf %122, %127 : vector<4x144xf32>
    %129 = vector.extract_strided_slice %8 {offsets = [5, 0, 0], sizes = [1, 4, 4], strides = [1, 1, 1]} : vector<9x4x4xbf16> to vector<1x4x4xbf16>
    %130 = vector.shape_cast %129 : vector<1x4x4xbf16> to vector<4x4xbf16>
    %131 = vector.extract_strided_slice %2 {offsets = [0, 20], sizes = [4, 144], strides = [1, 1]} : vector<4x256xbf16> to vector<4x144xbf16>
    %cst_21 = arith.constant dense<0.000000e+00> : vector<4x144xf32>
    %132 = tpu.matmul %130, %131, %cst_21 {dimension_numbers = #tpu.dot_dimension_numbers<[1], [0], [0], [1], [0, 0, 1, 1], [], []>} : vector<4x4xbf16>, vector<4x144xbf16>, vector<4x144xf32> -> vector<4x144xf32>
    %133 = arith.addf %128, %132 : vector<4x144xf32>
    %134 = vector.extract_strided_slice %9 {offsets = [0, 5, 0, 0], sizes = [1, 1, 4, 1], strides = [1, 1, 1, 1]} : vector<3x9x4x1xf32> to vector<1x1x4x1xf32>
    %135 = vector.shape_cast %134 : vector<1x1x4x1xf32> to vector<4x1xf32>
    %136 = vector.extract_strided_slice %7 {offsets = [0, 20], sizes = [4, 144], strides = [1, 1]} : vector<12x256xf32> to vector<4x144xf32>
    %137 = vector.broadcast %135 : vector<4x1xf32> to vector<4x144xf32>
    %138 = arith.mulf %137, %136 : vector<4x144xf32>
    %139 = arith.addf %133, %138 : vector<4x144xf32>
    %140 = vector.extract_strided_slice %9 {offsets = [1, 5, 0, 0], sizes = [1, 1, 4, 1], strides = [1, 1, 1, 1]} : vector<3x9x4x1xf32> to vector<1x1x4x1xf32>
    %141 = vector.shape_cast %140 : vector<1x1x4x1xf32> to vector<4x1xf32>
    %142 = vector.extract_strided_slice %7 {offsets = [4, 20], sizes = [4, 144], strides = [1, 1]} : vector<12x256xf32> to vector<4x144xf32>
    %143 = vector.broadcast %141 : vector<4x1xf32> to vector<4x144xf32>
    %144 = arith.mulf %143, %142 : vector<4x144xf32>
    %145 = arith.addf %139, %144 : vector<4x144xf32>
    %146 = vector.extract_strided_slice %9 {offsets = [2, 5, 0, 0], sizes = [1, 1, 4, 1], strides = [1, 1, 1, 1]} : vector<3x9x4x1xf32> to vector<1x1x4x1xf32>
    %147 = vector.shape_cast %146 : vector<1x1x4x1xf32> to vector<4x1xf32>
    %148 = vector.extract_strided_slice %7 {offsets = [8, 20], sizes = [4, 144], strides = [1, 1]} : vector<12x256xf32> to vector<4x144xf32>
    %149 = vector.broadcast %147 : vector<4x1xf32> to vector<4x144xf32>
    %150 = arith.mulf %149, %148 : vector<4x144xf32>
    %151 = arith.addf %145, %150 : vector<4x144xf32>
    %152 = vector.extract_strided_slice %8 {offsets = [6, 0, 0], sizes = [1, 4, 4], strides = [1, 1, 1]} : vector<9x4x4xbf16> to vector<1x4x4xbf16>
    %153 = vector.shape_cast %152 : vector<1x4x4xbf16> to vector<4x4xbf16>
    %154 = vector.extract_strided_slice %2 {offsets = [0, 36], sizes = [4, 144], strides = [1, 1]} : vector<4x256xbf16> to vector<4x144xbf16>
    %cst_22 = arith.constant dense<0.000000e+00> : vector<4x144xf32>
    %155 = tpu.matmul %153, %154, %cst_22 {dimension_numbers = #tpu.dot_dimension_numbers<[1], [0], [0], [1], [0, 0, 1, 1], [], []>} : vector<4x4xbf16>, vector<4x144xbf16>, vector<4x144xf32> -> vector<4x144xf32>
    %156 = arith.addf %151, %155 : vector<4x144xf32>
    %157 = vector.extract_strided_slice %9 {offsets = [0, 6, 0, 0], sizes = [1, 1, 4, 1], strides = [1, 1, 1, 1]} : vector<3x9x4x1xf32> to vector<1x1x4x1xf32>
    %158 = vector.shape_cast %157 : vector<1x1x4x1xf32> to vector<4x1xf32>
    %159 = vector.extract_strided_slice %7 {offsets = [0, 36], sizes = [4, 144], strides = [1, 1]} : vector<12x256xf32> to vector<4x144xf32>
    %160 = vector.broadcast %158 : vector<4x1xf32> to vector<4x144xf32>
    %161 = arith.mulf %160, %159 : vector<4x144xf32>
    %162 = arith.addf %156, %161 : vector<4x144xf32>
    %163 = vector.extract_strided_slice %9 {offsets = [1, 6, 0, 0], sizes = [1, 1, 4, 1], strides = [1, 1, 1, 1]} : vector<3x9x4x1xf32> to vector<1x1x4x1xf32>
    %164 = vector.shape_cast %163 : vector<1x1x4x1xf32> to vector<4x1xf32>
    %165 = vector.extract_strided_slice %7 {offsets = [4, 36], sizes = [4, 144], strides = [1, 1]} : vector<12x256xf32> to vector<4x144xf32>
    %166 = vector.broadcast %164 : vector<4x1xf32> to vector<4x144xf32>
    %167 = arith.mulf %166, %165 : vector<4x144xf32>
    %168 = arith.addf %162, %167 : vector<4x144xf32>
    %169 = vector.extract_strided_slice %9 {offsets = [2, 6, 0, 0], sizes = [1, 1, 4, 1], strides = [1, 1, 1, 1]} : vector<3x9x4x1xf32> to vector<1x1x4x1xf32>
    %170 = vector.shape_cast %169 : vector<1x1x4x1xf32> to vector<4x1xf32>
    %171 = vector.extract_strided_slice %7 {offsets = [8, 36], sizes = [4, 144], strides = [1, 1]} : vector<12x256xf32> to vector<4x144xf32>
    %172 = vector.broadcast %170 : vector<4x1xf32> to vector<4x144xf32>
    %173 = arith.mulf %172, %171 : vector<4x144xf32>
    %174 = arith.addf %168, %173 : vector<4x144xf32>
    %175 = vector.extract_strided_slice %8 {offsets = [7, 0, 0], sizes = [1, 4, 4], strides = [1, 1, 1]} : vector<9x4x4xbf16> to vector<1x4x4xbf16>
    %176 = vector.shape_cast %175 : vector<1x4x4xbf16> to vector<4x4xbf16>
    %177 = vector.extract_strided_slice %2 {offsets = [0, 37], sizes = [4, 144], strides = [1, 1]} : vector<4x256xbf16> to vector<4x144xbf16>
    %cst_23 = arith.constant dense<0.000000e+00> : vector<4x144xf32>
    %178 = tpu.matmul %176, %177, %cst_23 {dimension_numbers = #tpu.dot_dimension_numbers<[1], [0], [0], [1], [0, 0, 1, 1], [], []>} : vector<4x4xbf16>, vector<4x144xbf16>, vector<4x144xf32> -> vector<4x144xf32>
    %179 = arith.addf %174, %178 : vector<4x144xf32>
    %180 = vector.extract_strided_slice %9 {offsets = [0, 7, 0, 0], sizes = [1, 1, 4, 1], strides = [1, 1, 1, 1]} : vector<3x9x4x1xf32> to vector<1x1x4x1xf32>
    %181 = vector.shape_cast %180 : vector<1x1x4x1xf32> to vector<4x1xf32>
    %182 = vector.extract_strided_slice %7 {offsets = [0, 37], sizes = [4, 144], strides = [1, 1]} : vector<12x256xf32> to vector<4x144xf32>
    %183 = vector.broadcast %181 : vector<4x1xf32> to vector<4x144xf32>
    %184 = arith.mulf %183, %182 : vector<4x144xf32>
    %185 = arith.addf %179, %184 : vector<4x144xf32>
    %186 = vector.extract_strided_slice %9 {offsets = [1, 7, 0, 0], sizes = [1, 1, 4, 1], strides = [1, 1, 1, 1]} : vector<3x9x4x1xf32> to vector<1x1x4x1xf32>
    %187 = vector.shape_cast %186 : vector<1x1x4x1xf32> to vector<4x1xf32>
    %188 = vector.extract_strided_slice %7 {offsets = [4, 37], sizes = [4, 144], strides = [1, 1]} : vector<12x256xf32> to vector<4x144xf32>
    %189 = vector.broadcast %187 : vector<4x1xf32> to vector<4x144xf32>
    %190 = arith.mulf %189, %188 : vector<4x144xf32>
    %191 = arith.addf %185, %190 : vector<4x144xf32>
    %192 = vector.extract_strided_slice %9 {offsets = [2, 7, 0, 0], sizes = [1, 1, 4, 1], strides = [1, 1, 1, 1]} : vector<3x9x4x1xf32> to vector<1x1x4x1xf32>
    %193 = vector.shape_cast %192 : vector<1x1x4x1xf32> to vector<4x1xf32>
    %194 = vector.extract_strided_slice %7 {offsets = [8, 37], sizes = [4, 144], strides = [1, 1]} : vector<12x256xf32> to vector<4x144xf32>
    %195 = vector.broadcast %193 : vector<4x1xf32> to vector<4x144xf32>
    %196 = arith.mulf %195, %194 : vector<4x144xf32>
    %197 = arith.addf %191, %196 : vector<4x144xf32>
    %198 = vector.extract_strided_slice %8 {offsets = [8, 0, 0], sizes = [1, 4, 4], strides = [1, 1, 1]} : vector<9x4x4xbf16> to vector<1x4x4xbf16>
    %199 = vector.shape_cast %198 : vector<1x4x4xbf16> to vector<4x4xbf16>
    %200 = vector.extract_strided_slice %2 {offsets = [0, 38], sizes = [4, 144], strides = [1, 1]} : vector<4x256xbf16> to vector<4x144xbf16>
    %cst_24 = arith.constant dense<0.000000e+00> : vector<4x144xf32>
    %201 = tpu.matmul %199, %200, %cst_24 {dimension_numbers = #tpu.dot_dimension_numbers<[1], [0], [0], [1], [0, 0, 1, 1], [], []>} : vector<4x4xbf16>, vector<4x144xbf16>, vector<4x144xf32> -> vector<4x144xf32>
    %202 = arith.addf %197, %201 : vector<4x144xf32>
    %203 = vector.extract_strided_slice %9 {offsets = [0, 8, 0, 0], sizes = [1, 1, 4, 1], strides = [1, 1, 1, 1]} : vector<3x9x4x1xf32> to vector<1x1x4x1xf32>
    %204 = vector.shape_cast %203 : vector<1x1x4x1xf32> to vector<4x1xf32>
    %205 = vector.extract_strided_slice %7 {offsets = [0, 38], sizes = [4, 144], strides = [1, 1]} : vector<12x256xf32> to vector<4x144xf32>
    %206 = vector.broadcast %204 : vector<4x1xf32> to vector<4x144xf32>
    %207 = arith.mulf %206, %205 : vector<4x144xf32>
    %208 = arith.addf %202, %207 : vector<4x144xf32>
    %209 = vector.extract_strided_slice %9 {offsets = [1, 8, 0, 0], sizes = [1, 1, 4, 1], strides = [1, 1, 1, 1]} : vector<3x9x4x1xf32> to vector<1x1x4x1xf32>
    %210 = vector.shape_cast %209 : vector<1x1x4x1xf32> to vector<4x1xf32>
    %211 = vector.extract_strided_slice %7 {offsets = [4, 38], sizes = [4, 144], strides = [1, 1]} : vector<12x256xf32> to vector<4x144xf32>
    %212 = vector.broadcast %210 : vector<4x1xf32> to vector<4x144xf32>
    %213 = arith.mulf %212, %211 : vector<4x144xf32>
    %214 = arith.addf %208, %213 : vector<4x144xf32>
    %215 = vector.extract_strided_slice %9 {offsets = [2, 8, 0, 0], sizes = [1, 1, 4, 1], strides = [1, 1, 1, 1]} : vector<3x9x4x1xf32> to vector<1x1x4x1xf32>
    %216 = vector.shape_cast %215 : vector<1x1x4x1xf32> to vector<4x1xf32>
    %217 = vector.extract_strided_slice %7 {offsets = [8, 38], sizes = [4, 144], strides = [1, 1]} : vector<12x256xf32> to vector<4x144xf32>
    %218 = vector.broadcast %216 : vector<4x1xf32> to vector<4x144xf32>
    %219 = arith.mulf %218, %217 : vector<4x144xf32>
    %220 = arith.addf %214, %219 : vector<4x144xf32>
    %cst_25 = arith.constant 5.000000e-02 : f32
    %221 = vector.broadcast %cst_25 : f32 to vector<4x144xf32>
    %222 = arith.mulf %221, %220 : vector<4x144xf32>
    %223 = arith.maximumf %220, %222 : vector<4x144xf32>
    %224 = vector.extract_strided_slice %223 {offsets = [0, 0], sizes = [4, 16], strides = [1, 1]} : vector<4x144xf32> to vector<4x16xf32>
    %225 = vector.extract_strided_slice %223 {offsets = [0, 18], sizes = [4, 16], strides = [1, 1]} : vector<4x144xf32> to vector<4x16xf32>
    %226 = vector.extract_strided_slice %223 {offsets = [0, 36], sizes = [4, 16], strides = [1, 1]} : vector<4x144xf32> to vector<4x16xf32>
    %227 = vector.extract_strided_slice %223 {offsets = [0, 54], sizes = [4, 16], strides = [1, 1]} : vector<4x144xf32> to vector<4x16xf32>
    %228 = vector.extract_strided_slice %223 {offsets = [0, 72], sizes = [4, 16], strides = [1, 1]} : vector<4x144xf32> to vector<4x16xf32>
    %229 = vector.extract_strided_slice %223 {offsets = [0, 90], sizes = [4, 16], strides = [1, 1]} : vector<4x144xf32> to vector<4x16xf32>
    %230 = vector.extract_strided_slice %223 {offsets = [0, 108], sizes = [4, 16], strides = [1, 1]} : vector<4x144xf32> to vector<4x16xf32>
    %231 = vector.extract_strided_slice %223 {offsets = [0, 126], sizes = [4, 16], strides = [1, 1]} : vector<4x144xf32> to vector<4x16xf32>
    %232 = tpu.concatenate %224, %225, %226, %227, %228, %229, %230, %231 in 1 : vector<4x16xf32>, vector<4x16xf32>, vector<4x16xf32>, vector<4x16xf32>, vector<4x16xf32>, vector<4x16xf32>, vector<4x16xf32>, vector<4x16xf32> -> vector<4x128xf32>
    %c0_26 = arith.constant 0 : index
    %c0_27 = arith.constant 0 : index
    %c0_28 = arith.constant 0 : index
    %233 = vector.load %arg8[%c0_26, %c0_27, %c0_28] : memref<1x4x128xf32, #tpu.memory_space<vmem>>, vector<1x4x128xf32>
    %234 = vector.shape_cast %233 : vector<1x4x128xf32> to vector<4x128xf32>
    %235 = vector.shape_cast %232 : vector<4x128xf32> to vector<1x4x128xf32>
    tpu.vector_store %arg8[%c0_26, %c0_27, %c0_28], %235 {strides = array<i32>} : memref<1x4x128xf32, #tpu.memory_space<vmem>>, vector<1x4x128xf32>,
    return
  }
  func.func @transform_0(%arg0: i32, %arg1: i32) -> (i32, i32, i32, i32) {
    %c0_i32 = arith.constant 0 : i32
    %c0_i32_0 = arith.constant 0 : i32
    %c0_i32_1 = arith.constant 0 : i32
    return %arg0, %arg1, %c0_i32, %c0_i32_0 : i32, i32, i32, i32
  }
  func.func @transform_1(%arg0: i32, %arg1: i32) -> (i32, i32) {
    %c0_i32 = arith.constant 0 : i32
    %c0_i32_0 = arith.constant 0 : i32
    %c0_i32_1 = arith.constant 0 : i32
    return %c0_i32, %c0_i32_0 : i32, i32
  }
  func.func @transform_2(%arg0: i32, %arg1: i32) -> (i32, i32) {
    %c0_i32 = arith.constant 0 : i32
    %c0_i32_0 = arith.constant 0 : i32
    %c0_i32_1 = arith.constant 0 : i32
    return %c0_i32, %c0_i32_0 : i32, i32
  }
  func.func @transform_3(%arg0: i32, %arg1: i32) -> (i32, i32, i32) {
    %c0_i32 = arith.constant 0 : i32
    %c0_i32_0 = arith.constant 0 : i32
    %c0_i32_1 = arith.constant 0 : i32
    %c0_i32_2 = arith.constant 0 : i32
    return %c0_i32, %c0_i32_0, %c0_i32_1 : i32, i32, i32
  }
  func.func @transform_4(%arg0: i32, %arg1: i32) -> (i32, i32, i32, i32) {
    %c0_i32 = arith.constant 0 : i32
    %c0_i32_0 = arith.constant 0 : i32
    %c0_i32_1 = arith.constant 0 : i32
    %c0_i32_2 = arith.constant 0 : i32
    %c0_i32_3 = arith.constant 0 : i32
    return %c0_i32, %c0_i32_0, %c0_i32_1, %c0_i32_2 : i32, i32, i32, i32
  }
  func.func @transform_5(%arg0: i32, %arg1: i32) -> (i32, i32) {
    %c0_i32 = arith.constant 0 : i32
    %c0_i32_0 = arith.constant 0 : i32
    %c0_i32_1 = arith.constant 0 : i32
    return %c0_i32, %c0_i32_0 : i32, i32
  }
  func.func @transform_6(%arg0: i32, %arg1: i32) -> (i32, i32, i32) {
    %c0_i32 = arith.constant 0 : i32
    %c0_i32_0 = arith.constant 0 : i32
    return %arg0, %c0_i32, %arg1 : i32, i32, i32
  }
}

</mosaic_0001>

<bundles_post_ra>
// kernel: repblock_forward.1
= control target key start
LH: loop header
LB: loop body
LE: loop exit
PB: predicated region body
PF: predicated region fallthrough
CT: control target
= control target key end

     0   :  { %s1564_s21 = smov 0   ;;  %s1566_s22 = smov 0   ;;  %s2007_s0 = inlined_call_operand.vmem [shape: f32[2,2,4,256], index: 0, kind: input, shape index: {}]   ;;  %s2008_s1 = inlined_call_operand.vmem [shape: bf16[12,4], index: 1, kind: input, shape index: {}]   ;;  %s2009_s2 = inlined_call_operand.vmem [shape: f32[12,1], index: 2, kind: input, shape index: {}]   ;;  %s2010_s3 = inlined_call_operand.vmem [shape: bf16[9,4,4], index: 3, kind: input, shape index: {}]   ;;  %s2011_s4 = inlined_call_operand.vmem [shape: f32[3,9,4,1], index: 4, kind: input, shape index: {}]   ;;  %s2012_s5 = inlined_call_operand.vmem [shape: f32[4,1], index: 5, kind: input, shape index: {}]   ;;  %s2013_s6 = inlined_call_operand.vmem [shape: f32[2,4,256], index: 6, kind: output, shape index: {}]  }
   0x1   :  { %s1568_s23 = smov 0   ;;  %s1570_s24 = smov 0  }
   0x2   :  { %s1572_s25 = smov 0  }
   0x3 LB: > { %s25_s26 = sadd.s32 1, %s1504_s23  ;;  %s28_s27 = sadd.s32 1, %s1508_s24  ;;  %s1512_s25 = sphi %s1572_s25, %s16_s25   ;;  %s1508_s24 = sphi %s1570_s24, %s2017_s24   ;;  %s1504_s23 = sphi %s1568_s23, %s2016_s23   ;;  %s1500_s22 = sphi %s1566_s22, %s2015_s22   ;;  %s1496_s21 = sphi %s1564_s21, %s2014_s21  }
   0x4   : > { %p26_p0 = scmp.ge.s32.totalorder %s25_s26, 2  ;;  %p1383_p1 = scmp.ge.s32.totalorder %s1512_s25, 1 }
   0x5   : > { %p232_p2 = scmp.lt.s32.totalorder %s1512_s25, 5 }
   0x6   : > { %s2019_s26 = smov (%p26_p0, %s25_s26), 0  ;;  %s2021_s27 = smov (!%p26_p0, %s28_s27), %s1508_s24 }
   0x7   : > { %p233_p3 = pnand %p1383_p1, %p232_p2  ;;  %p30_p4 = scmp.ge.s32.totalorder %s2021_s27, 2 }
   0x8   : > { %p269_p5 = scmp.lt.s32.totalorder (!%p233_p3), %s1500_s22, 1  ;;  %p271_p6 = scmp.lt.s32.totalorder (!%p233_p3), %s1496_s21, 1 }
   0x9   : > { %s2023_s27 = smov (%p30_p4, %s2021_s27), 0  ;;  %236 = sbr.rel (%p233_p3) target bundleno = 718 (0x2ce), region = 44 }
   0xa   : > { %s1515_s12 = smov (!%p233_p3), 127   ;;  %s1518_s13 = smov (!%p233_p3), 110  }
   0xb   : > { %s1519_s14 = smov (!%p233_p3), 108   ;;  %s1521_s19 = smov (!%p233_p3), 91  }
   0xc   : > { %s1522_s28 = smov (!%p233_p3), 90   ;;  %s1526_s11 = smov (!%p233_p3), 118  }
   0xe   : > { %v394_v0 = vld [vmem:[%s2012_s5] sm:$0xf]  ;;  %v1514_v2 = vmov 0   ;;  %s2025_s22 = smov (!%p269_p5, %s1500_s22), 1  ;;  %s2027_s21 = smov (!%p271_p6, %s1496_s21), 1  ;;  %vm323_vm0 = vcmask 1041408  }
   0xf   : > { %v297_v1 = vld [vmem:[%s2009_s2] sm:$0xff]  ;;  %1472 = vset.pattern.permute.xlu1 %v1514_v2  ;;  %1471 = vset.pattern.permute.xlu0 %v1514_v2  ;;  %s1385_s10 = sshll.u32 %s2025_s22, 2  ;;  %v385_v4 = vld [vmem:[%s2011_s4 + $0x48] sm:$0xf]  ;;  %s1384_s15 = sshll.u32 %s2027_s21, 1  ;;  %vm319_vm1 = vcmask 31744  }
  0x10   : > { %397 = vperm.xlu1 %1472, %v394_v0   ;;  %301 = vperm.xlu0 %1471, %v297_v1   ;;  %v367_v3 = vld [vmem:[%s2011_s4] sm:$0xf]  ;;  %v298_v5 = vld [vmem:[%s2009_s2 + $0x8] sm:$0xf]  ;;  %s275_s16 = sadd.s32 %s1385_s10, %s1384_s15  ;;  %v368_v7 = vld [vmem:[%s2011_s4 + $0x4] sm:$0xf] }
  0x11   : > { %1473 = vset.pattern.permute.xlu2 %v1514_v2  ;;  %s1386_s17 = sshll.u32 %s275_s16, 2  ;;  %v376_v8 = vld [vmem:[%s2011_s4 + $0x24] sm:$0xf]  ;;  %v1391_v14 = vld [vmem:[%s2008_s1] sm:$0xf]  ;;  %s1516_s15 = smov 109  }
  0x12   : > { %446 = vperm.xlu2 %1473, %v367_v3   ;;  %s277_s20 = scalar_lea.vmem %s2007_s0, %s1386_s17  ;;  %v1415_v15 = vld [vmem:[%s2008_s1] sm:$0x30]  ;;  %v358_v22 = vld [vmem:[%s2010_s3] sm:$0x3]  ;;  %v369_v23 = vld [vmem:[%s2011_s4 + $0x8] sm:$0xf] }
  0x13   : > { %v287_v6 = vld [vmem:[%s277_s20] sm:$0xff]  ;;  %v1392_v20 = vor.u32 %v1415_v15, %v1391_v14  ;;  %v377_v24 = vld [vmem:[%s2011_s4 + $0x28] sm:$0xf]  ;;  %s1517_s20 = smov 126   ;;  %v378_v25 = vld [vmem:[%s2011_s4 + $0x2c] sm:$0xf] }
  0x14   : > { %289 = vst [vmem:[#allocation1] ss:$2 sm:$0xff] %v287_v6  ;;  %v386_v27 = vld [vmem:[%s2011_s4 + $0x4c] sm:$0xf]  ;;  %v387_v28 = vld [vmem:[%s2011_s4 + $0x50] sm:$0xf] }
  0x15   : > { %v370_v29 = vld [vmem:[%s2011_s4 + $0xc] sm:$0xf]  ;;  %s1520_s16 = smov 92   ;;  %v379_v30 = vld [vmem:[%s2011_s4 + $0x30] sm:$0xf]  ;;  %vm481_vm2 = vcmask 1039360  }
  0x16   : > { %v388_v31 = vld [vmem:[%s2011_s4 + $0x54] sm:$0xf]  ;;  %v371_v32 = vld [vmem:[%s2011_s4 + $0x10] sm:$0xf]  ;;  %v389_v38 = vld [vmem:[%s2011_s4 + $0x58] sm:$0xf] }
  0x17   : > { %v380_v34 = vld [vmem:[%s2011_s4 + $0x34] sm:$0xf]  ;;  %v1702_v48 = vld [vmem:[%s2010_s3 + $0x4] sm:$0x3]  ;;  %vm407_vm3 = vcmask 891904   ;;  %vm577_vm4 = vcmask 1031168  }
  0x18   : > { %470 = vperm.xlu1 %1472, %v385_v4   ;;  %306 = vperm.xlu0 %1471, %v298_v5   ;;  %v372_v42 = vld [vmem:[%s2011_s4 + $0x14] sm:$0xf]  ;;  %v359_v53 = vld [vmem:[%s2010_s3 + $0x2] sm:$0x3]  ;;  %vm673_vm5 = vcmask 900096   ;;  %vm864_vm6 = vcmask 883712  }
  0x19   : > { %vm960_vm7 = vcmask 752640   ;;  %vm1152_vm8 = vcmask 736256   ;;  %vm1056_vm9 = vcmask 744448   ;;  %s1525_s10 = smov 116   ;;  %s1528_s17 = smov 114   ;;  %vm1275_vm10 = vcmask 130048  }
  0x1a   : > { %vm1277_vm11 = vcmask 261120   ;;  %vm1279_vm12 = vcmask 392192   ;;  %vm1281_vm13 = vcmask 523264   ;;  %vm1283_vm14 = vcmask 654336  }
  0x1b   : > { %v290_v9 = vld.sshfl [vmem:[#allocation1] sm:$0xff pattern:$0x75316420]  ;;  %v291_v10 = vld.sshfl [vmem:[#allocation1 + $0x8] sm:$0xff pattern:$0x75316420] }
  0x1c   : > { %v294_v11 = vpack.c.bf16 %v291_v10, %v290_v9  ;;  %400 = vst [vmem:[#allocation1] ss:$2 sm:$0xff] %v287_v6  ;;  %vm1272_vm15 = vcmask 932864  }
  0x1e   : > { %v315_v12 = vunpack.c.l.b16 %v294_v11  ;;  %v316_v13 = vunpack.c.h.b16 %v294_v11 }
  0x20   : > { %522 = vperm.xlu1 %1472, %v368_v7   ;;  %455 = vperm.xlu0 %1471, %v376_v8   ;;  %v317_v16 = vpack.c.b16 %v315_v12, %v315_v12  ;;  %v318_v17 = vpack.c.b16 %v316_v13, %v316_v13 }
  0x22   : > { %v325_v18 = vsel %vm323_vm0, %v317_v16, 0  ;;  %v328_v19 = vsel %vm323_vm0, %v318_v17, 0  ;;  %477 = vrot.lane.b32.xlu2 %v317_v16, %s1515_s12 }
  0x23   : > { %337 = vmatpush.bf16.msra.mxu0 %v325_v18  ;;  %351 = vmatpush.bf16.msra.mxu1 %v328_v19  ;;  %v401_v21 = vld.sshfl [vmem:[#allocation1] sm:$0xff pattern:$0x75316420]  ;;  %v402_v26 = vld.sshfl [vmem:[#allocation1 + $0x8] sm:$0xff pattern:$0x75316420] }
  0x24   : > { %423 = vmatpush.bf16.msra.mxu2 %v325_v18  ;;  %436 = vmatpush.bf16.msra.mxu3 %v328_v19 }
  0x26   : > { %1393 = vmatmul.msk.bf16.vlgmr.msra.gmra.mxu0 %vm319_vm1, %v1392_v20  ;;  %1394 = vmatmul.msk.bf16.vlgmr.msra.gmra.mxu1 %vm319_vm1, %v1392_v20 }
  0x27   : > { %1395 = vmatmul.msk.bf16.vlgmr.msra.gmra.mxu2 %vm319_vm1, %v358_v22  ;;  %1396 = vmatmul.msk.bf16.vlgmr.msra.gmra.mxu3 %vm319_vm1, %v358_v22 }
  0x28   : > { %479 = vrot.lane.b32.xlu0 %v318_v17, %s1515_s12  ;;  %403 = vrot.lane.b32.xlu1 %v401_v21, %s1516_s15 }
  0x2a   : > { %575 = vrot.lane.b32.xlu2 %v318_v17, %s1517_s20 }
  0x30   : > { %618 = vperm.xlu0 %1471, %v369_v23   ;;  %541 = vperm.xlu1 %1472, %v377_v24  }
  0x32   : > { %405 = vrot.lane.b32.xlu2 %v402_v26, %s1516_s15 }
  0x38   : > { %637 = vperm.xlu0 %1471, %v378_v25   ;;  %557 = vperm.xlu1 %1472, %v386_v27  }
  0x3a   : > { %714 = vperm.xlu2 %1473, %v370_v29  }
  0x40   : > { %653 = vperm.xlu0 %1471, %v387_v28   ;;  %573 = vrot.lane.b32.xlu1 %v317_v16, %s1517_s20 }
  0x42   : > { %862 = vrot.lane.b32.xlu2 %v318_v17, %s1519_s14 }
  0x48   : > { %669 = vrot.lane.b32.xlu0 %v317_v16, %s1518_s13  ;;  %671 = vrot.lane.b32.xlu1 %v318_v17, %s1518_s13 }
  0x4a   : > { %733 = vperm.xlu2 %1473, %v379_v30  }
  0x50   : > { %765 = vrot.lane.b32.xlu0 %v317_v16, %s1516_s15  ;;  %767 = vrot.lane.b32.xlu1 %v318_v17, %s1516_s15 }
  0x52   : > { %1148 = vrot.lane.b32.xlu2 %v317_v16, %s1522_s28 }
  0x58   : > { %956 = vrot.lane.b32.xlu0 %v317_v16, %s1520_s16  ;;  %860 = vrot.lane.b32.xlu1 %v317_v16, %s1519_s14 }
  0x60   : > { %1052 = vrot.lane.b32.xlu0 %v317_v16, %s1521_s19  ;;  %958 = vrot.lane.b32.xlu1 %v318_v17, %s1520_s16 }
  0x68   : > { %1150 = vrot.lane.b32.xlu0 %v318_v17, %s1522_s28  ;;  %1054 = vrot.lane.b32.xlu1 %v318_v17, %s1521_s19 }
  0x6c   : > { %v447_v33 = vpop.permute.xlu2 %446 }
  0x70   : > { %749 = vperm.xlu0 %1471, %v388_v31  }
  0x78   : > { %810 = vperm.xlu0 %1471, %v371_v32  }
  0x7c   : > { %v478_v37 = vpop.permute.xlu2 %477 }
  0x80   : > { %828 = vperm.xlu0 %1471, %v380_v34  }
  0x82   : > { %v398_v35 = vpop.permute.xlu1 %397  ;;  %v302_v36 = vpop.permute.xlu0 %301 }
  0x84   : > { %v1692_v41 = vpop.permute.xlu2 %575 }
  0x85   : > { %v586_v46 = vsel %vm323_vm0, %v1692_v41, 0 }
  0x86   : > { %608 = vmatpush.bf16.msrb.mxu3 %v586_v46 }
  0x88   : > { %844 = vperm.xlu0 %1471, %v389_v38  }
  0x89   : > { %1400 = vmatmul.msk.bf16.vlgmr.msrb.gmra.mxu3 %vm319_vm1, %v1702_v48 }
  0x8a   : > { %v1690_v39 = vpop.permute.xlu1 %470  ;;  %v307_v40 = vpop.permute.xlu0 %306 }
  0x8c   : > { %v406_v45 = vpop.permute.xlu2 %405 }
  0x8d   : > { %v412_v47 = vadd.f32 %v406_v45, %v398_v35 }
  0x90   : > { %905 = vperm.xlu0 %1471, %v372_v42   ;;  %v361_v42 = vld [vmem:[%s2010_s3 + $0x6] sm:$0x3] }
  0x92   : > { %v456_v43 = vpop.permute.xlu0 %455  ;;  %v523_v44 = vpop.permute.xlu1 %522 }
  0x94   : > { %v715_v21 = vpop.permute.xlu2 %714 }
  0x9a   : > { %v480_v49 = vpop.permute.xlu0 %479  ;;  %v404_v54 = vpop.permute.xlu1 %403 }
  0x9b   : > { %v490_v50 = vsel %vm323_vm0, %v480_v49, 0  ;;  %v482_v51 = vsel %vm481_vm2, %v478_v37, %v480_v49  ;;  %v408_v55 = vsel %vm407_vm3, %v404_v54, %v406_v45  ;;  %v362_v49 = vld [vmem:[%s2010_s3 + $0x8] sm:$0x3] }
  0x9c   : > { %512 = vmatpush.bf16.msrb.mxu1 %v490_v50  ;;  %v487_v52 = vsel %vm323_vm0, %v482_v51, 0  ;;  %v411_v56 = vadd.f32 %v408_v55, %v398_v35  ;;  %v863_v35 = vpop.permute.xlu2 %862  ;;  %v390_v51 = vld [vmem:[%s2011_s4 + $0x5c] sm:$0xf] }
  0x9d   : > { %499 = vmatpush.bf16.msrb.mxu0 %v487_v52  ;;  %v873_v38 = vsel %vm323_vm0, %v863_v35, 0 }
  0x9f   : > { %1398 = vmatmul.msk.bf16.vlgmr.msrb.gmra.mxu1 %vm319_vm1, %v359_v53 }
  0xa0   : > { %1397 = vmatmul.msk.bf16.vlgmr.msrb.gmra.mxu0 %vm319_vm1, %v359_v53 }
  0xa2   : > { %v619_v57 = vpop.permute.xlu0 %618  ;;  %v1715_v58 = vpop.permute.xlu1 %541 }
  0xa3   : > { %v339_v59 = vpop.f32.mrf.mxu0  ;;  %v353_v60 = vpop.f32.mrf.mxu1 }
  0xa4   : > { %v1717_v61 = vadd.f32 %v339_v59, %v302_v36  ;;  %v1719_v62 = vadd.f32 %v353_v60, %v302_v36  ;;  %v1799_v55 = vpop.permute.xlu2 %733  ;;  %v374_v59 = vld [vmem:[%s2011_s4 + $0x1c] sm:$0xf] }
  0xa6   : > { %v526_v0 = vmul.f32 %v523_v44, %v1719_v62  ;;  %v621_v1 = vmul.f32 %v619_v57, %v1717_v61  ;;  %v525_v3 = vmul.f32 %v523_v44, %v1717_v61  ;;  %v1732_v4 = vrot.slane %v1719_v62, 4 }
  0xa7   : > { %v1735_v5 = vrot.slane %v1717_v61, 4  ;;  %v449_v9 = vmul.f32 %v447_v33, %v1717_v61  ;;  %v450_v11 = vmul.f32 %v447_v33, %v1719_v62  ;;  %v718_v34 = vmul.f32 %v715_v21, %v1719_v62 }
  0xa8   : > { %531 = vrot.lane.b32.xlu0 %v526_v0, %s1515_s12  ;;  %625 = vrot.lane.b32.xlu1 %v621_v1, %s1517_s20  ;;  %v465_v19 = vmul.f32 %v1732_v4, %v456_v43  ;;  %v622_v37 = vmul.f32 %v619_v57, %v1719_v62  ;;  %v717_v52 = vmul.f32 %v715_v21, %v1717_v61  ;;  %v363_v21 = vld [vmem:[%s2010_s3 + $0xa] sm:$0x3] }
  0xa9   : > { %529 = vrot.lane.b32.xlu2 %v525_v3, %s1515_s12  ;;  %v464_v20 = vmul.f32 %v1735_v5, %v456_v43 }
  0xaa   : > { %v1721_v63 = vpop.permute.xlu0 %637  ;;  %v1725_v2 = vpop.permute.xlu1 %557 }
  0xab   : > { %v425_v6 = vpop.f32.mrf.mxu2  ;;  %v438_v7 = vpop.f32.mrf.mxu3 }
  0xac   : > { %v442_v8 = vadd.f32 %v425_v6, %v411_v56  ;;  %v443_v10 = vadd.f32 %v438_v7, %v412_v47  ;;  %v341_v12 = vpop.f32.mrf.mxu0  ;;  %v355_v13 = vpop.f32.mrf.mxu1 }
  0xad   : > { %v1739_v14 = vadd.f32 %v341_v12, %v307_v40  ;;  %v1741_v15 = vadd.f32 %v355_v13, %v307_v40  ;;  %v1149_v6 = vpop.permute.xlu2 %1148 }
  0xae   : > { %v451_v17 = vadd.f32 %v449_v9, %v442_v8  ;;  %v452_v18 = vadd.f32 %v450_v11, %v443_v10  ;;  %v393_v10 = vld [vmem:[%s2011_s4 + $0x68] sm:$0xf] }
  0xaf   : > { %v474_v24 = vmul.f32 %v1690_v39, %v1741_v15  ;;  %v473_v26 = vmul.f32 %v1690_v39, %v1739_v14  ;;  %v561_v44 = vmul.f32 %v1725_v2, %v1741_v15 }
  0xb0   : > { %v467_v23 = vadd.f32 %v465_v19, %v452_v18  ;;  %v466_v25 = vadd.f32 %v464_v20, %v451_v17  ;;  %546 = vrot.lane.b32.xlu0 %v1732_v4, %s1515_s12  ;;  %640 = vrot.lane.b32.xlu1 %v1735_v5, %s1517_s20  ;;  %v381_v20 = vld [vmem:[%s2011_s4 + $0x38] sm:$0xf] }
  0xb1   : > { %544 = vrot.lane.b32.xlu2 %v1735_v5, %s1515_s12 }
  0xb2   : > { %v1743_v16 = vpop.permute.xlu0 %653  ;;  %v574_v22 = vpop.permute.xlu1 %573  ;;  %v1760_v29 = vadd.f32 %v474_v24, %v467_v23  ;;  %v1762_v30 = vadd.f32 %v473_v26, %v466_v25 }
  0xb3   : > { %v578_v27 = vsel %vm577_vm4, %v574_v22, %v1692_v41  ;;  %v440_v31 = vpop.f32.mrf.mxu3  ;;  %v427_v32 = vpop.f32.mrf.mxu2 }
  0xb4   : > { %v583_v28 = vsel %vm323_vm0, %v578_v27, 0 }
  0xb5   : > { %595 = vmatpush.bf16.msrb.mxu2 %v583_v28  ;;  %v364_v28 = vld [vmem:[%s2010_s3 + $0xc] sm:$0x3] }
  0xb8   : > { %1399 = vmatmul.msk.bf16.vlgmr.msrb.gmra.mxu2 %vm319_vm1, %v1702_v48  ;;  %723 = vrot.lane.b32.xlu0 %v718_v34, %s1518_s13  ;;  %v656_v34 = vmul.f32 %v1743_v16, %v1739_v14 }
  0xb9   : > { %736 = vrot.lane.b32.xlu1 %v1735_v5, %s1518_s13  ;;  %627 = vrot.lane.b32.xlu2 %v622_v37, %s1517_s20  ;;  %v657_v37 = vmul.f32 %v1743_v16, %v1741_v15 }
  0xba   : > { %v670_v33 = vpop.permute.xlu0 %669  ;;  %v672_v36 = vpop.permute.xlu1 %671 }
  0xbb   : > { %v674_v39 = vsel %vm673_vm5, %v670_v33, %v672_v36  ;;  %v682_v40 = vsel %vm323_vm0, %v672_v36, 0 }
  0xbc   : > { %v679_v41 = vsel %vm323_vm0, %v674_v39, 0  ;;  %704 = vmatpush.bf16.msra.mxu1 %v682_v40 }
  0xbd   : > { %691 = vmatpush.bf16.msra.mxu0 %v679_v41 }
  0xbf   : > { %1402 = vmatmul.msk.bf16.vlgmr.msra.gmra.mxu1 %vm319_vm1, %v361_v42 }
  0xc0   : > { %895 = vmatpush.bf16.msrb.mxu1 %v873_v38  ;;  %1401 = vmatmul.msk.bf16.vlgmr.msra.gmra.mxu0 %vm319_vm1, %v361_v42 }
  0xc1   : > { %566 = vrot.lane.b32.xlu0 %v561_v44, %s1515_s12  ;;  %642 = vrot.lane.b32.xlu2 %v1732_v4, %s1517_s20 }
  0xc2   : > { %v766_v43 = vpop.permute.xlu0 %765  ;;  %v768_v45 = vpop.permute.xlu1 %767 }
  0xc3   : > { %v770_v46 = vsel %vm407_vm3, %v766_v43, %v768_v45  ;;  %v778_v47 = vsel %vm323_vm0, %v768_v45, 0 }
  0xc4   : > { %v775_v48 = vsel %vm323_vm0, %v770_v46, 0  ;;  %800 = vmatpush.bf16.msra.mxu3 %v778_v47 }
  0xc5   : > { %787 = vmatpush.bf16.msra.mxu2 %v775_v48 }
  0xc7   : > { %1404 = vmatmul.msk.bf16.vlgmr.msra.gmra.mxu3 %vm319_vm1, %v362_v49 }
  0xc8   : > { %1403 = vmatmul.msk.bf16.vlgmr.msra.gmra.mxu2 %vm319_vm1, %v362_v49 }
  0xc9   : > { %940 = vperm.xlu0 %1471, %v390_v51   ;;  %721 = vrot.lane.b32.xlu2 %v717_v52, %s1518_s13 }
  0xca   : > { %v957_v50 = vpop.permute.xlu0 %956  ;;  %v861_v53 = vpop.permute.xlu1 %860 }
  0xcb   : > { %v865_v54 = vsel %vm864_vm6, %v861_v53, %v863_v35  ;;  %v560_v35 = vmul.f32 %v1725_v2, %v1739_v14 }
  0xcc   : > { %v870_v56 = vsel %vm323_vm0, %v865_v54, 0 }
  0xcd   : > { %882 = vmatpush.bf16.msrb.mxu0 %v870_v56 }
  0xcf   : > { %1406 = vmatmul.msk.bf16.vlgmr.msrb.gmra.mxu1 %vm319_vm1, %v363_v21 }
  0xd0   : > { %1405 = vmatmul.msk.bf16.vlgmr.msrb.gmra.mxu0 %vm319_vm1, %v363_v21 }
  0xd1   : > { %1097 = vperm.xlu0 %1471, %v374_v59   ;;  %738 = vrot.lane.b32.xlu2 %v1732_v4, %s1518_s13 }
  0xd2   : > { %v1053_v57 = vpop.permute.xlu0 %1052  ;;  %v959_v60 = vpop.permute.xlu1 %958 }
  0xd3   : > { %v961_v0 = vsel %vm960_vm7, %v957_v50, %v959_v60  ;;  %v969_v1 = vsel %vm323_vm0, %v959_v60, 0 }
  0xd4   : > { %v966_v3 = vsel %vm323_vm0, %v961_v0, 0  ;;  %991 = vmatpush.bf16.msrb.mxu3 %v969_v1 }
  0xd5   : > { %978 = vmatpush.bf16.msrb.mxu2 %v966_v3 }
  0xd7   : > { %1408 = vmatmul.msk.bf16.vlgmr.msrb.gmra.mxu3 %vm319_vm1, %v364_v28 }
  0xd8   : > { %1407 = vmatmul.msk.bf16.vlgmr.msrb.gmra.mxu2 %vm319_vm1, %v364_v28 }
  0xd9   : > { %1228 = vperm.xlu0 %1471, %v393_v10  }
  0xda   : > { %v1151_v7 = vpop.permute.xlu0 %1150  ;;  %v1055_v12 = vpop.permute.xlu1 %1054 }
  0xdb   : > { %v1161_v8 = vsel %vm323_vm0, %v1151_v7, 0  ;;  %v1153_v9 = vsel %vm1152_vm8, %v1149_v6, %v1151_v7  ;;  %v1057_v13 = vsel %vm1056_vm9, %v1053_v57, %v1055_v12  ;;  %v1065_v17 = vsel %vm323_vm0, %v1055_v12, 0  ;;  %v392_v6 = vld [vmem:[%s2011_s4 + $0x64] sm:$0xf]  ;;  %v391_v7 = vld [vmem:[%s2011_s4 + $0x60] sm:$0xf] }
  0xdc   : > { %v1158_v11 = vsel %vm323_vm0, %v1153_v9, 0  ;;  %1183 = vmatpush.bf16.msra.mxu3 %v1161_v8  ;;  %v1062_v18 = vsel %vm323_vm0, %v1057_v13, 0  ;;  %1087 = vmatpush.bf16.msra.mxu1 %v1065_v17  ;;  %vm1285_vm0 = vcmask 785408  }
  0xdd   : > { %1170 = vmatpush.bf16.msra.mxu2 %v1158_v11  ;;  %1074 = vmatpush.bf16.msra.mxu0 %v1062_v18 }
  0xe1   : > { %924 = vperm.xlu0 %1471, %v381_v20  }
  0xe2   : > { %v750_v19 = vpop.permute.xlu0 %749 }
  0xe3   : > { %v752_v38 = vmul.f32 %v750_v19, %v1739_v14  ;;  %v753_v40 = vmul.f32 %v750_v19, %v1741_v15 }
  0xea   : > { %v811_v22 = vpop.permute.xlu0 %810 }
  0xeb   : > { %v813_v23 = vmul.f32 %v811_v22, %v1717_v61  ;;  %v814_v24 = vmul.f32 %v811_v22, %v1719_v62 }
  0xed   : > { %817 = vrot.lane.b32.xlu1 %v813_v23, %s1516_s15  ;;  %819 = vrot.lane.b32.xlu2 %v814_v24, %s1516_s15 }
  0xf2   : > { %v1832_v25 = vpop.permute.xlu0 %828 }
  0xf5   : > { %831 = vrot.lane.b32.xlu1 %v1735_v5, %s1516_s15  ;;  %833 = vrot.lane.b32.xlu2 %v1732_v4, %s1516_s15 }
  0xfa   : > { %v845_v26 = vpop.permute.xlu0 %844 }
  0xfb   : > { %v847_v41 = vmul.f32 %v845_v26, %v1739_v14  ;;  %v848_v52 = vmul.f32 %v845_v26, %v1741_v15 }
 0x102   : > { %v906_v27 = vpop.permute.xlu0 %905 }
 0x103   : > { %v908_v31 = vmul.f32 %v906_v27, %v1717_v61  ;;  %v909_v32 = vmul.f32 %v906_v27, %v1719_v62  ;;  %v530_v33 = vpop.permute.xlu2 %529 }
 0x105   : > { %912 = vrot.lane.b32.xlu1 %v908_v31, %s1519_s14  ;;  %914 = vrot.lane.b32.xlu2 %v909_v32, %s1519_s14 }
 0x10b   : > { %v545_v36 = vpop.permute.xlu2 %544 }
 0x10c   : > { %v610_v2 = vpop.f32.mrf.mxu3 }
 0x10d   : > { %660 = vrot.lane.b32.xlu1 %v656_v34, %s1517_s20  ;;  %564 = vrot.lane.b32.xlu2 %v560_v35, %s1515_s12 }
 0x113   : > { %v628_v39 = vpop.permute.xlu2 %627 }
 0x114   : > { %v612_v53 = vpop.f32.mrf.mxu3 }
 0x115   : > { %756 = vrot.lane.b32.xlu1 %v752_v38, %s1518_s13  ;;  %662 = vrot.lane.b32.xlu2 %v657_v37, %s1517_s20 }
 0x11a   : > { %v532_v45 = vpop.permute.xlu0 %531  ;;  %v626_v46 = vpop.permute.xlu1 %625 }
 0x11b   : > { %v534_v47 = vsel %vm481_vm2, %v530_v33, %v532_v45  ;;  %v1866_v49 = vsel %vm577_vm4, %v626_v46, %v628_v39  ;;  %v643_v50 = vpop.permute.xlu2 %642 }
 0x11c   : > { %v514_v42 = vpop.f32.mrf.mxu1  ;;  %v648_v20 = vmul.f32 %v643_v50, %v1721_v63 }
 0x11d   : > { %v519_v43 = vadd.f32 %v514_v42, %v1760_v29  ;;  %v501_v44 = vpop.f32.mrf.mxu0  ;;  %851 = vrot.lane.b32.xlu1 %v847_v41, %s1516_s15  ;;  %758 = vrot.lane.b32.xlu2 %v753_v40, %s1518_s13  ;;  %v373_v29 = vld [vmem:[%s2011_s4 + $0x18] sm:$0xf] }
 0x11e   : > { %v518_v16 = vadd.f32 %v501_v44, %v1762_v30 }
 0x11f   : > { %v538_v48 = vadd.f32 %v532_v45, %v519_v43 }
 0x120   : > { %v537_v51 = vadd.f32 %v534_v47, %v518_v16 }
 0x122   : > { %v547_v56 = vpop.permute.xlu0 %546  ;;  %v641_v57 = vpop.permute.xlu1 %640 }
 0x123   : > { %v548_v59 = vsel %vm481_vm2, %v545_v36, %v547_v56  ;;  %v552_v60 = vmul.f32 %v547_v56, %v1715_v58  ;;  %v644_v0 = vsel %vm577_vm4, %v641_v57, %v643_v50  ;;  %v1876_v1 = vpop.permute.xlu2 %721 }
 0x124   : > { %v516_v54 = vpop.f32.mrf.mxu1  ;;  %v551_v3 = vmul.f32 %v548_v59, %v1715_v58  ;;  %v375_v58 = vld [vmem:[%s2011_s4 + $0x20] sm:$0xf]  ;;  %v647_v50 = vmul.f32 %v644_v0, %v1721_v63 }
 0x125   : > { %1001 = vperm.xlu1 %1472, %v373_v29   ;;  %853 = vrot.lane.b32.xlu2 %v848_v52, %s1516_s15  ;;  %v503_v30 = vpop.f32.mrf.mxu0  ;;  %v554_v8 = vadd.f32 %v552_v60, %v538_v48  ;;  %s1527_s15 = smov 120  }
 0x126   : > { %v553_v9 = vadd.f32 %v551_v3, %v537_v51 }
 0x12a   : > { %v1885_v10 = vpop.permute.xlu0 %723 }
 0x12b   : > { %v737_v11 = vpop.permute.xlu1 %736  ;;  %v739_v12 = vpop.permute.xlu2 %738 }
 0x12c   : > { %v1888_v13 = vsel %vm673_vm5, %v737_v11, %v739_v12  ;;  %v744_v56 = vmul.f32 %v739_v12, %v1799_v55 }
 0x12d   : > { %1132 = vperm.xlu1 %1472, %v392_v6   ;;  %1036 = vperm.xlu2 %1473, %v391_v7  }
 0x133   : > { %v567_v17 = vpop.permute.xlu0 %566 }
 0x134   : > { %v572_v18 = vadd.f32 %v567_v17, %v554_v8 }
 0x135   : > { %927 = vrot.lane.b32.xlu1 %v1735_v5, %s1519_s14  ;;  %1193 = vperm.xlu2 %1473, %v375_v58  }
 0x136   : > { %v615_v19 = vadd.f32 %v610_v2, %v572_v18 }
 0x138   : > { %v634_v21 = vadd.f32 %v628_v39, %v615_v19 }
 0x13a   : > { %v650_v22 = vadd.f32 %v648_v20, %v634_v21  ;;  %v365_v21 = vld [vmem:[%s2010_s3 + $0xe] sm:$0x3] }
 0x13b   : > { %v941_v23 = vpop.permute.xlu0 %940  ;;  %v597_v27 = vpop.f32.mrf.mxu2  ;;  %1410 = vmatmul.msk.bf16.vlgmr.msra.gmra.mxu1 %vm319_vm1, %v365_v21  ;;  %1409 = vmatmul.msk.bf16.vlgmr.msra.gmra.mxu0 %vm319_vm1, %v365_v21 }
 0x13c   : > { %v943_v24 = vmul.f32 %v941_v23, %v1739_v14  ;;  %v944_v26 = vmul.f32 %v941_v23, %v1741_v15  ;;  %v706_v31 = vpop.f32.mrf.mxu1  ;;  %v726_v23 = vsel %vm673_vm5, %v1876_v1, %v1885_v10  ;;  %v366_v1 = vld [vmem:[%s2010_s3 + $0x10] sm:$0x3] }
 0x13d   : > { %929 = vrot.lane.b32.xlu2 %v1732_v4, %s1519_s14  ;;  %v693_v41 = vpop.f32.mrf.mxu0  ;;  %1412 = vmatmul.msk.bf16.vlgmr.msra.gmra.mxu3 %vm319_vm1, %v366_v1 }
 0x13e   : > { %947 = vrot.lane.b32.xlu1 %v943_v24, %s1519_s14  ;;  %1411 = vmatmul.msk.bf16.vlgmr.msra.gmra.mxu2 %vm319_vm1, %v366_v1  ;;  %vm1287_vm1 = vcmask 916480  }
 0x143   : > { %v599_v32 = vpop.f32.mrf.mxu2  ;;  %v1098_v24 = vpop.permute.xlu0 %1097 }
 0x144   : > { %v708_v34 = vpop.f32.mrf.mxu1 }
 0x145   : > { %949 = vrot.lane.b32.xlu2 %v944_v26, %s1519_s14  ;;  %v695_v48 = vpop.f32.mrf.mxu0 }
 0x147   : > { %v820_v28 = vpop.permute.xlu2 %819 }
 0x14a   : > { %v802_v35 = vpop.f32.mrf.mxu3 }
 0x14b   : > { %v789_v45 = vpop.f32.mrf.mxu2 }
 0x14c   : > { %v897_v39 = vpop.f32.mrf.mxu1 }
 0x14d   : > { %1023 = vrot.lane.b32.xlu2 %v1735_v5, %s1520_s16  ;;  %v884_v59 = vpop.f32.mrf.mxu0 }
 0x14f   : > { %v834_v33 = vpop.permute.xlu2 %833 }
 0x150   : > { %v839_v63 = vmul.f32 %v834_v33, %v1832_v25 }
 0x152   : > { %v804_v40 = vpop.f32.mrf.mxu3 }
 0x153   : > { %v791_v54 = vpop.f32.mrf.mxu2 }
 0x154   : > { %v899_v46 = vpop.f32.mrf.mxu1 }
 0x155   : > { %v886_v0 = vpop.f32.mrf.mxu0 }
 0x15f   : > { %v818_v36 = vpop.permute.xlu1 %817  ;;  %v915_v37 = vpop.permute.xlu2 %914 }
 0x160   : > { %v821_v38 = vsel %vm407_vm3, %v818_v36, %v820_v28 }
 0x167   : > { %v832_v2 = vpop.permute.xlu1 %831  ;;  %v565_v42 = vpop.permute.xlu2 %564 }
 0x168   : > { %v835_v43 = vsel %vm407_vm3, %v832_v2, %v834_v33  ;;  %v568_v44 = vsel %vm481_vm2, %v565_v42, %v567_v17 }
 0x169   : > { %v571_v16 = vadd.f32 %v568_v44, %v553_v9  ;;  %v1101_v44 = vmul.f32 %v1098_v24, %v1719_v62 }
 0x16b   : > { %v614_v47 = vadd.f32 %v597_v27, %v571_v16  ;;  %v743_v27 = vmul.f32 %v1888_v13, %v1799_v55  ;;  %v838_v55 = vmul.f32 %v835_v43, %v1832_v25  ;;  %v1229_v13 = vpop.permute.xlu0 %1228  ;;  %v980_v43 = vpop.f32.mrf.mxu2 }
 0x16d   : > { %v633_v51 = vadd.f32 %v1866_v49, %v614_v47 }
 0x16f   : > { %v663_v29 = vpop.permute.xlu2 %662  ;;  %v649_v52 = vadd.f32 %v647_v50, %v633_v51 }
 0x170   : > { %v668_v53 = vadd.f32 %v663_v29, %v650_v22 }
 0x172   : > { %v711_v30 = vadd.f32 %v706_v31, %v668_v53  ;;  %v993_v31 = vpop.f32.mrf.mxu3 }
 0x174   : > { %v730_v57 = vadd.f32 %v1885_v10, %v711_v30  ;;  %v382_v30 = vld [vmem:[%s2011_s4 + $0x3c] sm:$0xf] }
 0x176   : > { %v746_v60 = vadd.f32 %v744_v56, %v730_v57  ;;  %v982_v57 = vpop.f32.mrf.mxu2 }
 0x177   : > { %v913_v3 = vpop.permute.xlu1 %912  ;;  %v759_v6 = vpop.permute.xlu2 %758 }
 0x178   : > { %v917_v7 = vsel %vm864_vm6, %v913_v3, %v915_v37  ;;  %v764_v8 = vadd.f32 %v759_v6, %v746_v60 }
 0x17a   : > { %v807_v9 = vadd.f32 %v802_v35, %v764_v8 }
 0x17c   : > { %v825_v49 = vadd.f32 %v820_v28, %v807_v9 }
 0x17e   : > { %v841_v11 = vadd.f32 %v839_v63, %v825_v49  ;;  %v1232_v63 = vmul.f32 %v1229_v13, %v1741_v15 }
 0x17f   : > { %v661_v58 = vpop.permute.xlu1 %660  ;;  %v854_v17 = vpop.permute.xlu2 %853 }
 0x180   : > { %v664_v18 = vsel %vm577_vm4, %v661_v58, %v663_v29  ;;  %v859_v12 = vadd.f32 %v854_v17, %v841_v11  ;;  %v925_v29 = vpop.permute.xlu0 %924 }
 0x181   : > { %v667_v19 = vadd.f32 %v664_v18, %v649_v52 }
 0x182   : > { %v902_v20 = vadd.f32 %v897_v39, %v859_v12 }
 0x183   : > { %v710_v22 = vadd.f32 %v693_v41, %v667_v19  ;;  %v384_v19 = vld [vmem:[%s2011_s4 + $0x44] sm:$0xf] }
 0x184   : > { %v921_v26 = vadd.f32 %v915_v37, %v902_v20  ;;  %v995_v37 = vpop.f32.mrf.mxu3  ;;  %v1231_v20 = vmul.f32 %v1229_v13, %v1739_v14 }
 0x185   : > { %v729_v28 = vadd.f32 %v726_v23, %v710_v22 }
 0x187   : > { %v757_v32 = vpop.permute.xlu1 %756  ;;  %v1037_v33 = vpop.permute.xlu2 %1036  ;;  %v745_v34 = vadd.f32 %v743_v27, %v729_v28 }
 0x188   : > { %v760_v35 = vsel %vm673_vm5, %v757_v32, %v759_v6  ;;  %v1039_v36 = vmul.f32 %v1037_v33, %v1739_v14  ;;  %v1100_v6 = vmul.f32 %v1098_v24, %v1717_v61 }
 0x189   : > { %v763_v39 = vadd.f32 %v760_v35, %v745_v34 }
 0x18a   : > { %1043 = vrot.lane.b32.xlu2 %v1039_v36, %s1520_s16 }
 0x18b   : > { %v806_v40 = vadd.f32 %v789_v45, %v763_v39 }
 0x18d   : > { %v824_v10 = vadd.f32 %v821_v38, %v806_v40  ;;  %v383_v38 = vld [vmem:[%s2011_s4 + $0x40] sm:$0xf] }
 0x18f   : > { %v852_v41 = vpop.permute.xlu1 %851  ;;  %v1194_v2 = vpop.permute.xlu2 %1193  ;;  %v840_v42 = vadd.f32 %v838_v55, %v824_v10 }
 0x190   : > { %v855_v16 = vsel %vm407_vm3, %v852_v41, %v854_v17 }
 0x191   : > { %v858_v45 = vadd.f32 %v855_v16, %v840_v42 }
 0x192   : > { %1106 = vrot.lane.b32.xlu2 %v1101_v44, %s1521_s19 }
 0x193   : > { %v901_v46 = vadd.f32 %v884_v59, %v858_v45  ;;  %v1196_v59 = vmul.f32 %v1194_v2, %v1717_v61 }
 0x195   : > { %v920_v47 = vadd.f32 %v917_v7, %v901_v46  ;;  %v1040_v7 = vmul.f32 %v1037_v33, %v1741_v15 }
 0x197   : > { %v1002_v48 = vpop.permute.xlu1 %1001  ;;  %v930_v50 = vpop.permute.xlu2 %929 }
 0x198   : > { %v1004_v51 = vmul.f32 %v1002_v48, %v1717_v61  ;;  %v1005_v25 = vmul.f32 %v1002_v48, %v1719_v62  ;;  %v935_v52 = vmul.f32 %v930_v50, %v925_v29 }
 0x19a   : > { %1010 = vrot.lane.b32.xlu1 %v1005_v25, %s1520_s16  ;;  %1008 = vrot.lane.b32.xlu0 %v1004_v51, %s1520_s16  ;;  %v937_v53 = vadd.f32 %v935_v52, %v921_v26 }
 0x19b   : > { %1116 = vperm.xlu2 %1473, %v383_v38  }
 0x19f   : > { %v950_v54 = vpop.permute.xlu2 %949  ;;  %v1133_v60 = vpop.permute.xlu1 %1132 }
 0x1a0   : > { %v955_v56 = vadd.f32 %v950_v54, %v937_v53  ;;  %v1135_v17 = vmul.f32 %v1133_v60, %v1739_v14  ;;  %v1136_v18 = vmul.f32 %v1133_v60, %v1741_v15 }
 0x1a2   : > { %v998_v3 = vadd.f32 %v993_v31, %v955_v56  ;;  %1020 = vperm.xlu1 %1472, %v382_v30   ;;  %1025 = vrot.lane.b32.xlu0 %v1732_v4, %s1520_s16 }
 0x1a3   : > { %1200 = vrot.lane.b32.xlu2 %v1196_v59, %s1522_s28 }
 0x1a7   : > { %v928_v8 = vpop.permute.xlu1 %927  ;;  %v1024_v22 = vpop.permute.xlu2 %1023 }
 0x1a8   : > { %v931_v9 = vsel %vm864_vm6, %v928_v8, %v930_v50 }
 0x1a9   : > { %v934_v49 = vmul.f32 %v931_v9, %v925_v29 }
 0x1aa   : > { %1104 = vrot.lane.b32.xlu1 %v1100_v6, %s1521_s19  ;;  %1045 = vrot.lane.b32.xlu0 %v1040_v7, %s1520_s16 }
 0x1ab   : > { %1217 = vrot.lane.b32.xlu2 %v1732_v4, %s1522_s28  ;;  %v936_v0 = vadd.f32 %v934_v49, %v920_v47 }
 0x1b0   : > { %v948_v61 = vpop.permute.xlu1 %947 }
 0x1b1   : > { %v951_v11 = vsel %vm864_vm6, %v948_v61, %v950_v54 }
 0x1b2   : > { %1121 = vrot.lane.b32.xlu1 %v1732_v4, %s1521_s19  ;;  %1119 = vrot.lane.b32.xlu0 %v1735_v5, %s1521_s19  ;;  %v954_v58 = vadd.f32 %v951_v11, %v936_v0  ;;  %v1197_v4 = vmul.f32 %v1194_v2, %v1719_v62 }
 0x1b3   : > { %1237 = vrot.lane.b32.xlu2 %v1232_v63, %s1522_s28 }
 0x1b4   : > { %v997_v12 = vadd.f32 %v980_v43, %v954_v58 }
 0x1b8   : > { %v1089_v15 = vpop.f32.mrf.mxu1  ;;  %v1076_v21 = vpop.f32.mrf.mxu0 }
 0x1ba   : > { %1141 = vrot.lane.b32.xlu1 %v1136_v18, %s1521_s19  ;;  %1139 = vrot.lane.b32.xlu0 %v1135_v17, %s1521_s19  ;;  %s1523_s19 = smov 122  }
 0x1c0   : > { %v1091_v23 = vpop.f32.mrf.mxu1  ;;  %v1078_v24 = vpop.f32.mrf.mxu0 }
 0x1c1   : > { %v1172_v28 = vpop.f32.mrf.mxu2 }
 0x1c2   : > { %1215 = vrot.lane.b32.xlu1 %v1735_v5, %s1522_s28  ;;  %1202 = vrot.lane.b32.xlu0 %v1197_v4, %s1522_s28  ;;  %v1185_v5 = vpop.f32.mrf.mxu3 }
 0x1c9   : > { %v1174_v35 = vpop.f32.mrf.mxu2 }
 0x1ca   : > { %1235 = vrot.lane.b32.xlu1 %v1231_v20, %s1522_s28  ;;  %1212 = vperm.xlu0 %1471, %v384_v19   ;;  %v1187_v36 = vpop.f32.mrf.mxu3  ;;  %s1524_s28 = smov 124  }
 0x1e4   : > { %v1044_v62 = vpop.permute.xlu2 %1043 }
 0x1ec   : > { %v1107_v33 = vpop.permute.xlu2 %1106 }
 0x1f5   : > { %v1117_v13 = vpop.permute.xlu2 %1116 }
 0x1fd   : > { %v1201_v47 = vpop.permute.xlu2 %1200 }
 0x205   : > { %v1218_v56 = vpop.permute.xlu2 %1217 }
 0x20c   : > { %v1009_v26 = vpop.permute.xlu0 %1008  ;;  %v1011_v27 = vpop.permute.xlu1 %1010 }
 0x20d   : > { %v1017_v14 = vadd.f32 %v1011_v27, %v998_v3  ;;  %v1013_v41 = vsel %vm960_vm7, %v1009_v26, %v1011_v27  ;;  %v1238_v0 = vpop.permute.xlu2 %1237 }
 0x20e   : > { %v1016_v16 = vadd.f32 %v1013_v41, %v997_v12 }
 0x214   : > { %v1026_v31 = vpop.permute.xlu0 %1025  ;;  %v1021_v32 = vpop.permute.xlu1 %1020 }
 0x215   : > { %v1031_v34 = vmul.f32 %v1026_v31, %v1021_v32  ;;  %v1027_v37 = vsel %vm960_vm7, %v1024_v22, %v1026_v31 }
 0x216   : > { %v1030_v44 = vmul.f32 %v1027_v37, %v1021_v32 }
 0x217   : > { %v1033_v39 = vadd.f32 %v1031_v34, %v1017_v14 }
 0x218   : > { %v1032_v46 = vadd.f32 %v1030_v44, %v1016_v16 }
 0x21c   : > { %v1105_v40 = vpop.permute.xlu1 %1104  ;;  %v1046_v1 = vpop.permute.xlu0 %1045 }
 0x21d   : > { %v1051_v55 = vadd.f32 %v1046_v1, %v1033_v39  ;;  %v1047_v45 = vsel %vm960_vm7, %v1044_v62, %v1046_v1  ;;  %v1109_v29 = vsel %vm1056_vm9, %v1105_v40, %v1107_v33 }
 0x21e   : > { %v1050_v48 = vadd.f32 %v1047_v45, %v1032_v46 }
 0x21f   : > { %v1094_v10 = vadd.f32 %v1089_v15, %v1051_v55 }
 0x220   : > { %v1093_v38 = vadd.f32 %v1076_v21, %v1050_v48 }
 0x221   : > { %v1113_v9 = vadd.f32 %v1107_v33, %v1094_v10 }
 0x222   : > { %v1112_v52 = vadd.f32 %v1109_v29, %v1093_v38 }
 0x224   : > { %v1122_v2 = vpop.permute.xlu1 %1121  ;;  %v1120_v42 = vpop.permute.xlu0 %1119 }
 0x225   : > { %v1123_v25 = vsel %vm1056_vm9, %v1120_v42, %v1122_v2  ;;  %v1127_v3 = vmul.f32 %v1122_v2, %v1117_v13 }
 0x226   : > { %v1126_v43 = vmul.f32 %v1123_v25, %v1117_v13 }
 0x227   : > { %v1129_v11 = vadd.f32 %v1127_v3, %v1113_v9 }
 0x228   : > { %v1128_v57 = vadd.f32 %v1126_v43, %v1112_v52 }
 0x22c   : > { %v1142_v50 = vpop.permute.xlu1 %1141  ;;  %v1140_v51 = vpop.permute.xlu0 %1139 }
 0x22d   : > { %v1143_v53 = vsel %vm1056_vm9, %v1140_v51, %v1142_v50  ;;  %v1147_v18 = vadd.f32 %v1142_v50, %v1129_v11 }
 0x22e   : > { %v1146_v59 = vadd.f32 %v1143_v53, %v1128_v57 }
 0x22f   : > { %v1190_v19 = vadd.f32 %v1185_v5, %v1147_v18 }
 0x230   : > { %v1189_v6 = vadd.f32 %v1172_v28, %v1146_v59 }
 0x234   : > { %v1216_v54 = vpop.permute.xlu1 %1215  ;;  %v1203_v30 = vpop.permute.xlu0 %1202 }
 0x235   : > { %v1205_v60 = vsel %vm1152_vm8, %v1201_v47, %v1203_v30  ;;  %v1219_v7 = vsel %vm1152_vm8, %v1216_v54, %v1218_v56  ;;  %v1209_v21 = vadd.f32 %v1203_v30, %v1190_v19 }
 0x236   : > { %v1208_v63 = vadd.f32 %v1205_v60, %v1189_v6 }
 0x23c   : > { %v1213_v8 = vpop.permute.xlu0 %1212  ;;  %v1236_v49 = vpop.permute.xlu1 %1235 }
 0x23d   : > { %v1222_v61 = vmul.f32 %v1219_v7, %v1213_v8  ;;  %v1239_v17 = vsel %vm1152_vm8, %v1236_v49, %v1238_v0  ;;  %v1223_v20 = vmul.f32 %v1218_v56, %v1213_v8 }
 0x23f   : > { %v1224_v58 = vadd.f32 %v1222_v61, %v1208_v63  ;;  %v1225_v22 = vadd.f32 %v1223_v20, %v1209_v21 }
 0x241   : > { %v1242_v12 = vadd.f32 %v1239_v17, %v1224_v58  ;;  %v1243_v23 = vadd.f32 %v1238_v0, %v1225_v22 }
 0x243   : > { %v1244_v4 = vmul.f32 0.05, %v1242_v12  ;;  %v1245_v24 = vmul.f32 0.05, %v1243_v23 }
 0x245   : > { %v1246_v15 = vmax.f32 %v1242_v12, %v1244_v4  ;;  %v1247_v62 = vmax.f32 %v1243_v23, %v1245_v24 }
 0x247   : > { %1255 = vrot.lane.b32.xlu2 %v1246_v15, %s1523_s19  ;;  %1252 = vrot.lane.b32.xlu1 %v1246_v15, %s1524_s28 }
 0x248   : > { %1249 = vrot.lane.b32.xlu0 %v1246_v15, %s1517_s20  ;;  %s1387_s20 = sshll.u32 %s2025_s22, 1 }
 0x249   : > { %s283_s14 = sadd.s32 %s1387_s20, %s2027_s21 }
 0x24a   : > { %s1388_s18 = sshll.u32 %s283_s14, 2 }
 0x24b   : > { %s285_s7 = scalar_lea.vmem %s2013_s6, %s1388_s18 }
 0x24f   : > { %1264 = vrot.lane.b32.xlu2 %v1246_v15, %s1525_s10  ;;  %1261 = vrot.lane.b32.xlu1 %v1246_v15, %s1526_s11 }
 0x250   : > { %1258 = vrot.lane.b32.xlu0 %v1246_v15, %s1527_s15 }
 0x257   : > { %1270 = vrot.lane.b32.xlu1 %v1247_v62, %s1528_s17 }
 0x258   : > { %1268 = vrot.lane.b32.xlu0 %v1246_v15, %s1528_s17 }
 0x2a1   : > { %v1256_v28 = vpop.permute.xlu2 %1255 }
 0x2a9   : > { %v1265_v39 = vpop.permute.xlu2 %1264 }
 0x2b9   : > { %v1253_v26 = vpop.permute.xlu1 %1252 }
 0x2ba   : > { %v1250_v27 = vpop.permute.xlu0 %1249 }
 0x2bb   : > { %v1276_v5 = vsel %vm1275_vm10, %v1246_v15, %v1250_v27 }
 0x2bc   : > { %v1278_v31 = vsel %vm1277_vm11, %v1276_v5, %v1253_v26 }
 0x2bd   : > { %v1280_v34 = vsel %vm1279_vm12, %v1278_v31, %v1256_v28 }
 0x2c1   : > { %v1262_v32 = vpop.permute.xlu1 %1261 }
 0x2c2   : > { %v1259_v33 = vpop.permute.xlu0 %1258 }
 0x2c3   : > { %v1282_v35 = vsel %vm1281_vm13, %v1280_v34, %v1259_v33 }
 0x2c4   : > { %v1284_v36 = vsel %vm1283_vm14, %v1282_v35, %v1262_v32 }
 0x2c5   : > { %v1286_v1 = vsel %vm1285_vm0, %v1284_v36, %v1265_v39 }
 0x2c9   : > { %v1271_v14 = vpop.permute.xlu1 %1270 }
 0x2ca   : > { %v1269_v40 = vpop.permute.xlu0 %1268 }
 0x2cb   : > { %v1273_v55 = vsel %vm1272_vm15, %v1269_v40, %v1271_v14 }
 0x2cc   : > { %v1288_v10 = vsel %vm1287_vm1, %v1286_v1, %v1273_v55 }
 0x2cd   : > { %1289 = vst [vmem:[%s285_s7] sm:$0xf] %v1288_v10 }
 0x2ce PF: > { %s16_s25 = sadd.s32 1, %s1512_s25   ;;  %s2014_s21 = smov %s1504_s23 }
 0x2cf   : > { %p13_p7 = scmp.ge.s32.totalorder %s16_s25, 6   ;;  %s2015_s22 = smov %s1508_s24 }
 0x2d0   : > { %s2016_s23 = smov %s2019_s26  ;;  %s2017_s24 = smov %s2023_s27 }
 0x2d1   :  { %15 = sbr.rel (!%p13_p7) target bundleno = 3 (0x3), region = 74 }

</bundles_post_ra>
